<compile_context>
chip_gen: v6e
topology: v6e:2x2x1
jax: 0.10.0
libtpu: 0.0.40
codegen_flags: <defaults>
</compile_context>

<pallas_src>
import functools

import numpy as np
import jax
import jax.numpy as jnp
from jax.experimental import pallas as pl
from jax.experimental.pallas import tpu as pltpu

EPS = 1e-5  # torch InstanceNorm3d default


def _round_up(x, m):
    return ((x + m - 1) // m) * m


# ---------------------------------------------------------------------------
# Pallas kernel: S-tiled (im2col-matmul conv) + streaming InstanceNorm + act.
# ---------------------------------------------------------------------------
def _contracting_block_kernel(p_ref, w_ref, o_ref, sum_ref, ssq_ref, *,
                              s_real, ts, num_s_tiles, leaky):
    # p_ref:   (TS, K_pad)      bf16 patch tile for this (batch, s-tile)
    # w_ref:   (K_pad, OC_pad)  bf16 conv weight (K-major, tap-major/channel-minor)
    # o_ref:   (S_pad, OC_pad)  bf16 per-batch output block (VMEM-resident across s)
    # sum_ref: (1, OC_pad)      fp32 running per-channel sum
    # ssq_ref: (1, OC_pad)      fp32 running per-channel sum of squares
    s = pl.program_id(1)

    @pl.when(s == 0)
    def _():
        sum_ref[...] = jnp.zeros_like(sum_ref)
        ssq_ref[...] = jnp.zeros_like(ssq_ref)

    # Conv tile as MXU matmul: bf16 inputs, fp32 accumulation.
    y = jnp.dot(p_ref[...], w_ref[...], preferred_element_type=jnp.float32)

    # Streaming per-channel stats in fp32 (zero-padded rows/cols contribute 0;
    # the conv bias is dropped since a per-channel constant cancels under
    # InstanceNorm3d(affine=False)).
    sum_ref[...] += jnp.sum(y, axis=0, keepdims=True)
    ssq_ref[...] += jnp.sum(y * y, axis=0, keepdims=True)

    # Stage the raw conv output into the resident per-batch output block (bf16).
    row = pl.multiple_of(s * ts, ts)
    o_ref[pl.ds(row, ts), :] = y.astype(o_ref.dtype)

    @pl.when(s == num_s_tiles - 1)
    def _():
        inv_n = jnp.float32(1.0 / s_real)
        mean = sum_ref[...] * inv_n                      # (1, OC_pad)
        # Single-pass biased variance (torch default).  Note: E[y^2]-mean^2 can
        # cancel when |mean| >> std; acceptable here, fp32 accumulators.
        var = ssq_ref[...] * inv_n - mean * mean
        inv_std = jax.lax.rsqrt(var + EPS)

        def norm_tile(t, carry):
            r = pl.multiple_of(t * ts, ts)
            blk = o_ref[pl.ds(r, ts), :].astype(jnp.float32)
            v = (blk - mean) * inv_std
            if leaky:
                v = jnp.where(v > 0, v, jnp.float32(0.2) * v)
            else:
                v = jnp.maximum(v, 0.0)
            o_ref[pl.ds(r, ts), :] = v.astype(o_ref.dtype)
            return carry

        jax.lax.fori_loop(0, num_s_tiles, norm_tile, 0,
                          unroll=min(num_s_tiles, 8))


# ---------------------------------------------------------------------------
# Wrapper: reflect-pad + channels-last/tap-major im2col glue + pallas_call.
# ---------------------------------------------------------------------------
def contracting_block(x, weight, bias=None, *, use_bn=True, activation="relu",
                      s_tile=2048, out_dtype=jnp.bfloat16,
                      channels_last_out=False):
    """ContractingBlock forward (Conv3d C->2C, k=3, s=2, p=1 reflect; IN; act).

    x: (N, C, D, H, W).  weight: (2C, C, 3, 3, 3).  bias: (2C,) -- accepted for
    API parity but unused: a per-channel constant bias cancels exactly under
    InstanceNorm3d(affine=False), which is why use_bn=False is guarded below.
    """
    if not use_bn:
        # TODO(synk): add a bias+activation-only epilogue for the use_bn=False path.
        raise NotImplementedError("use_bn=False path is not implemented.")
    del bias  # cancels exactly under InstanceNorm (see docstring)

    N, C, D, H, W = x.shape
    OC = weight.shape[0]
    assert weight.shape == (OC, C, 3, 3, 3) and OC == 2 * C

    # Output spatial dims for kernel=3, stride=2, padding=1.
    Do = (D + 2 - 3) // 2 + 1
    Ho = (H + 2 - 3) // 2 + 1
    Wo = (W + 2 - 3) // 2 + 1
    S = Do * Ho * Wo
    K = 27 * C

    # Lane-dense padding for the MXU contraction (K) and output channels (OC).
    K_pad = _round_up(K, 128)
    OC_pad = _round_up(OC, 128)

    # S tiling: multiple of 16 (bf16 sublane packing); big tiles amortize the
    # ~0.35us per-grid-step overhead and keep the epilogue loop short.
    TS = min(s_tile, _round_up(S, 16))
    TS = max(16, (TS // 16) * 16)
    S_pad = _round_up(S, TS)
    num_s_tiles = S_pad // TS

    # --- im2col glue: channels-last + tap-major, so NO transpose of the 27x tensor.
    # TODO(synk): for larger C, replace with a direct in-kernel conv (see header).
    x_cl = jnp.transpose(x.astype(jnp.bfloat16), (0, 2, 3, 4, 1))     # (N,D,H,W,C)
    xp = jnp.pad(x_cl, ((0, 0), (1, 1), (1, 1), (1, 1), (0, 0)), mode="reflect")
    taps = []
    for kd in range(3):
        for kh in range(3):
            for kw in range(3):
                taps.append(xp[:, kd:kd + 2 * Do:2,
                               kh:kh + 2 * Ho:2,
                               kw:kw + 2 * Wo:2, :])                   # (N,Do,Ho,Wo,C)
    patches = jnp.stack(taps, axis=4)                                  # (N,Do,Ho,Wo,27,C)
    patches = patches.reshape(N, S, K)                                 # contiguous collapse
    patches = jnp.pad(patches, ((0, 0), (0, S_pad - S), (0, K_pad - K)))

    # Weight reordered to the matching (kd,kh,kw,c) K-order (tiny tensor, free).
    w_mat = jnp.transpose(weight, (2, 3, 4, 1, 0)).reshape(K, OC).astype(jnp.bfloat16)
    w_mat = jnp.pad(w_mat, ((0, K_pad - K), (0, OC_pad - OC)))

    # --- VMEM budget: ~3/4 of physical VMEM (48 MiB on v7x, 96 MiB on v5e/v6e),
    # bumped if the double-buffered blocks need more.
    out_bytes = jnp.dtype(out_dtype).itemsize
    needed = (2 * TS * K_pad * 2                 # patch tile, double-buffered, bf16
              + 2 * K_pad * OC_pad * 2           # weight tile, double-buffered, bf16
              + 2 * S_pad * OC_pad * out_bytes   # resident output, double-buffered
              + 8 * OC_pad * 4)                  # stats scratch (+slack)
    try:
        vmem_cap = int(pltpu.get_tpu_info().vmem_capacity_bytes)
    except Exception:
        vmem_cap = 128 * 1024 * 1024
    vmem_limit = min(vmem_cap,
                     max(min(100 << 20, (vmem_cap * 3) // 4), needed + (4 << 20)))

    kernel = functools.partial(
        _contracting_block_kernel,
        s_real=S, ts=TS, num_s_tiles=num_s_tiles,
        leaky=(activation != "relu"),
    )

    out = pl.pallas_call(
        kernel,
        out_shape=jax.ShapeDtypeStruct((N, S_pad, OC_pad), out_dtype),
        grid_spec=pltpu.PrefetchScalarGridSpec(
            num_scalar_prefetch=0,
            grid=(N, num_s_tiles),
            in_specs=[
                pl.BlockSpec((pl.Squeezed(), TS, K_pad), lambda n, s: (n, s, 0)),
                pl.BlockSpec((K_pad, OC_pad), lambda n, s: (0, 0)),
            ],
            out_specs=pl.BlockSpec((pl.Squeezed(), S_pad, OC_pad),
                                   lambda n, s: (n, 0, 0)),
            scratch_shapes=[
                pltpu.VMEM((1, OC_pad), jnp.float32),   # per-channel sum
                pltpu.VMEM((1, OC_pad), jnp.float32),   # per-channel sum of squares
            ],
        ),
        compiler_params=pltpu.CompilerParams(
            dimension_semantics=("parallel", "arbitrary"),
            vmem_limit_bytes=vmem_limit,
        ),
    )(patches, w_mat)

    out = out[:, :S, :OC]                                # strip padding: (N, S, OC)
    if channels_last_out:
        return out.reshape(N, Do, Ho, Wo, OC)            # free reshape, no transpose
    # Match the PyTorch module's NCDHW layout (one XLA transpose on bf16 output).
    return out.reshape(N, Do, Ho, Wo, OC).transpose(0, 4, 1, 2, 3)


# ---------------------------------------------------------------------------
# Pure-JAX reference (fp32, includes the bias to verify it truly cancels).
# ---------------------------------------------------------------------------
def contracting_block_ref(x, weight, bias):
    xp = jnp.pad(x, ((0, 0), (0, 0), (1, 1), (1, 1), (1, 1)), mode="reflect")
    y = jax.lax.conv_general_dilated(
        xp, weight, window_strides=(2, 2, 2), padding="VALID",
        dimension_numbers=("NCDHW", "OIDHW", "NCDHW"),
        precision=jax.lax.Precision.HIGHEST)
    y = y + bias.reshape(1, -1, 1, 1, 1)
    mean = jnp.mean(y, axis=(2, 3, 4), keepdims=True)
    var = jnp.mean(jnp.square(y - mean), axis=(2, 3, 4), keepdims=True)
    y = (y - mean) * jax.lax.rsqrt(var + EPS)
    return jnp.maximum(y, 0.0)


if __name__ == "__main__":
    # Small shapes consistent with Conv3d(C -> 2C, k=3, s=2, p=1, reflect).
    N, C, D, H, W = 2, 4, 16, 16, 16
    key = jax.random.PRNGKey(0)
    kx, kw, kb = jax.random.split(key, 3)

    x = jax.random.normal(kx, (N, C, D, H, W), dtype=jnp.float32)

    # Deterministic PyTorch-style uniform init (fan_in = C*27).
    fan_in = C * 27
    bound = 1.0 / np.sqrt(fan_in)
    weight = jax.random.uniform(kw, (2 * C, C, 3, 3, 3), jnp.float32, -bound, bound)
    bias = jax.random.uniform(kb, (2 * C,), jnp.float32, -bound, bound)

    ref = jax.block_until_ready(contracting_block_ref(x, weight, bias))

    # Default config: one big S tile per batch.
    out = jax.block_until_ready(contracting_block(x, weight, bias))
    np.testing.assert_allclose(np.asarray(out.astype(jnp.float32)), np.asarray(ref),
                               rtol=2e-2, atol=3e-2)

    # Multi-tile config exercises the streaming-stats path (S split into 4 tiles).
    out_mt = jax.block_until_ready(contracting_block(x, weight, bias, s_tile=128))
    np.testing.assert_allclose(np.asarray(out_mt.astype(jnp.float32)), np.asarray(ref),
                               rtol=2e-2, atol=3e-2)

    print("KERNEL_OK")
</pallas_src>

<mosaic_0001>
module attributes {stable_mosaic.version = 11 : i64} {
  func.func @_contracting_block_kernel(%arg0: i32, %arg1: i32, %arg2: memref<1x512x128xbf16, #tpu.memory_space<vmem>>, %arg3: memref<128x128xbf16, #tpu.memory_space<vmem>>, %arg4: memref<1x512x128xbf16, #tpu.memory_space<vmem>>, %arg5: memref<1x128xf32, #tpu.memory_space<vmem>>, %arg6: memref<1x128xf32, #tpu.memory_space<vmem>>) attributes {dimension_semantics = [#tpu.dimension_semantics<parallel>, #tpu.dimension_semantics<arbitrary>], iteration_bounds = array<i64: 2, 1>, scalar_prefetch = 0 : i64, scratch_operands = 2 : i64, tpu.core_type = #tpu.core_type<tc>, window_params = [{transform_indices = @transform_0, window_bounds = array<i64: 1, 512, 128>}, {pipeline_mode = #tpu.pipeline_mode<synchronous>, transform_indices = @transform_1, window_bounds = array<i64: 128, 128>}, {transform_indices = @transform_2, window_bounds = array<i64: 1, 512, 128>}]} {
    %c0_i32 = arith.constant 0 : i32
    %0 = arith.cmpi eq, %arg1, %c0_i32 : i32
    %1 = arith.extui %0 : i1 to i32
    %c0_i32_0 = arith.constant 0 : i32
    %2 = arith.cmpi ne, %1, %c0_i32_0 : i32
    scf.if %2 {
      %cst_19 = arith.constant 0.000000e+00 : f32
      %28 = vector.broadcast %cst_19 : f32 to vector<1x128xf32>
      %c0_20 = arith.constant 0 : index
      %c0_21 = arith.constant 0 : index
      %29 = vector.load %arg5[%c0_20, %c0_21] : memref<1x128xf32, #tpu.memory_space<vmem>>, vector<1x128xf32>
      tpu.vector_store %arg5[%c0_20, %c0_21], %28 {strides = array<i32>} : memref<1x128xf32, #tpu.memory_space<vmem>>, vector<1x128xf32>,
      %cst_22 = arith.constant 0.000000e+00 : f32
      %30 = vector.broadcast %cst_22 : f32 to vector<1x128xf32>
      %c0_23 = arith.constant 0 : index
      %c0_24 = arith.constant 0 : index
      %31 = vector.load %arg6[%c0_23, %c0_24] : memref<1x128xf32, #tpu.memory_space<vmem>>, vector<1x128xf32>
      tpu.vector_store %arg6[%c0_23, %c0_24], %30 {strides = array<i32>} : memref<1x128xf32, #tpu.memory_space<vmem>>, vector<1x128xf32>,
    } else {
    }
    %c0 = arith.constant 0 : index
    %c0_1 = arith.constant 0 : index
    %c0_2 = arith.constant 0 : index
    %3 = vector.load %arg2[%c0, %c0_1, %c0_2] : memref<1x512x128xbf16, #tpu.memory_space<vmem>>, vector<1x512x128xbf16>
    %4 = vector.shape_cast %3 : vector<1x512x128xbf16> to vector<512x128xbf16>
    %c0_3 = arith.constant 0 : index
    %c0_4 = arith.constant 0 : index
    %5 = vector.load %arg3[%c0_3, %c0_4] : memref<128x128xbf16, #tpu.memory_space<vmem>>, vector<128x128xbf16>
    %cst = arith.constant dense<0.000000e+00> : vector<512x128xf32>
    %6 = tpu.matmul %4, %5, %cst {dimension_numbers = #tpu.dot_dimension_numbers<[1], [0], [0], [1], [0, 0, 1, 1], [], []>} : vector<512x128xbf16>, vector<128x128xbf16>, vector<512x128xf32> -> vector<512x128xf32>
    %c0_5 = arith.constant 0 : index
    %c0_6 = arith.constant 0 : index
    %7 = vector.load %arg5[%c0_5, %c0_6] : memref<1x128xf32, #tpu.memory_space<vmem>>, vector<1x128xf32>
    %cst_7 = arith.constant dense<0.000000e+00> : vector<128xf32>
    %8 = vector.multi_reduction <add>, %6, %cst_7 [0] : vector<512x128xf32> to vector<128xf32>
    %9 = vector.shape_cast %8 : vector<128xf32> to vector<1x128xf32>
    %10 = arith.addf %7, %9 : vector<1x128xf32>
    %c0_8 = arith.constant 0 : index
    %c0_9 = arith.constant 0 : index
    %11 = vector.load %arg5[%c0_8, %c0_9] : memref<1x128xf32, #tpu.memory_space<vmem>>, vector<1x128xf32>
    tpu.vector_store %arg5[%c0_8, %c0_9], %10 {strides = array<i32>} : memref<1x128xf32, #tpu.memory_space<vmem>>, vector<1x128xf32>,
    %c0_10 = arith.constant 0 : index
    %c0_11 = arith.constant 0 : index
    %12 = vector.load %arg6[%c0_10, %c0_11] : memref<1x128xf32, #tpu.memory_space<vmem>>, vector<1x128xf32>
    %13 = arith.mulf %6, %6 : vector<512x128xf32>
    %cst_12 = arith.constant dense<0.000000e+00> : vector<128xf32>
    %14 = vector.multi_reduction <add>, %13, %cst_12 [0] : vector<512x128xf32> to vector<128xf32>
    %15 = vector.shape_cast %14 : vector<128xf32> to vector<1x128xf32>
    %16 = arith.addf %12, %15 : vector<1x128xf32>
    %c0_13 = arith.constant 0 : index
    %c0_14 = arith.constant 0 : index
    %17 = vector.load %arg6[%c0_13, %c0_14] : memref<1x128xf32, #tpu.memory_space<vmem>>, vector<1x128xf32>
    tpu.vector_store %arg6[%c0_13, %c0_14], %16 {strides = array<i32>} : memref<1x128xf32, #tpu.memory_space<vmem>>, vector<1x128xf32>,
    %c512_i32 = arith.constant 512 : i32
    %18 = arith.muli %arg1, %c512_i32 : i32
    %19 = tpu.assume_multiple %18, 512 : i32
    %20 = arith.truncf %6 : vector<512x128xf32> to vector<512x128xbf16>
    %c0_15 = arith.constant 0 : index
    %21 = arith.index_cast %19 : i32 to index
    %c0_16 = arith.constant 0 : index
    %22 = vector.load %arg4[%c0_15, %21, %c0_16] : memref<1x512x128xbf16, #tpu.memory_space<vmem>>, vector<1x512x128xbf16>
    %23 = vector.shape_cast %22 : vector<1x512x128xbf16> to vector<512x128xbf16>
    %24 = vector.shape_cast %20 : vector<512x128xbf16> to vector<1x512x128xbf16>
    tpu.vector_store %arg4[%c0_15, %21, %c0_16], %24 {strides = array<i32>} : memref<1x512x128xbf16, #tpu.memory_space<vmem>>, vector<1x512x128xbf16>,
    %c0_i32_17 = arith.constant 0 : i32
    %25 = arith.cmpi eq, %arg1, %c0_i32_17 : i32
    %26 = arith.extui %25 : i1 to i32
    %c0_i32_18 = arith.constant 0 : i32
    %27 = arith.cmpi ne, %26, %c0_i32_18 : i32
    scf.if %27 {
      %c0_19 = arith.constant 0 : index
      %c0_20 = arith.constant 0 : index
      %28 = vector.load %arg5[%c0_19, %c0_20] : memref<1x128xf32, #tpu.memory_space<vmem>>, vector<1x128xf32>
      %cst_21 = arith.constant 0.001953125 : f32
      %29 = vector.broadcast %cst_21 : f32 to vector<1x128xf32>
      %30 = arith.mulf %28, %29 : vector<1x128xf32>
      %c0_22 = arith.constant 0 : index
      %c0_23 = arith.constant 0 : index
      %31 = vector.load %arg6[%c0_22, %c0_23] : memref<1x128xf32, #tpu.memory_space<vmem>>, vector<1x128xf32>
      %cst_24 = arith.constant 0.001953125 : f32
      %32 = vector.broadcast %cst_24 : f32 to vector<1x128xf32>
      %33 = arith.mulf %31, %32 : vector<1x128xf32>
      %34 = arith.mulf %30, %30 : vector<1x128xf32>
      %35 = arith.subf %33, %34 : vector<1x128xf32>
      %cst_25 = arith.constant 9.99999974E-6 : f32
      %36 = vector.broadcast %cst_25 : f32 to vector<1x128xf32>
      %37 = arith.addf %35, %36 : vector<1x128xf32>
      %38 = math.rsqrt %37 : vector<1x128xf32>
      %c0_i32_26 = arith.constant 0 : i32
      %c512_i32_27 = arith.constant 512 : i32
      %39 = arith.muli %c0_i32_26, %c512_i32_27 : i32
      %40 = tpu.assume_multiple %39, 512 : i32
      %c0_28 = arith.constant 0 : index
      %41 = arith.index_cast %40 : i32 to index
      %c0_29 = arith.constant 0 : index
      %42 = vector.load %arg4[%c0_28, %41, %c0_29] : memref<1x512x128xbf16, #tpu.memory_space<vmem>>, vector<1x512x128xbf16>
      %43 = vector.shape_cast %42 : vector<1x512x128xbf16> to vector<512x128xbf16>
      %44 = arith.extf %43 : vector<512x128xbf16> to vector<512x128xf32>
      %45 = vector.broadcast %30 : vector<1x128xf32> to vector<512x128xf32>
      %46 = arith.subf %44, %45 : vector<512x128xf32>
      %47 = vector.broadcast %38 : vector<1x128xf32> to vector<512x128xf32>
      %48 = arith.mulf %46, %47 : vector<512x128xf32>
      %cst_30 = arith.constant 0.000000e+00 : f32
      %49 = vector.broadcast %cst_30 : f32 to vector<512x128xf32>
      %50 = arith.maximumf %48, %49 : vector<512x128xf32>
      %51 = arith.truncf %50 : vector<512x128xf32> to vector<512x128xbf16>
      %c0_31 = arith.constant 0 : index
      %52 = arith.index_cast %40 : i32 to index
      %c0_32 = arith.constant 0 : index
      %53 = vector.load %arg4[%c0_31, %52, %c0_32] : memref<1x512x128xbf16, #tpu.memory_space<vmem>>, vector<1x512x128xbf16>
      %54 = vector.shape_cast %53 : vector<1x512x128xbf16> to vector<512x128xbf16>
      %55 = vector.shape_cast %51 : vector<512x128xbf16> to vector<1x512x128xbf16>
      tpu.vector_store %arg4[%c0_31, %52, %c0_32], %55 {strides = array<i32>} : memref<1x512x128xbf16, #tpu.memory_space<vmem>>, vector<1x512x128xbf16>,
      %c1_i32 = arith.constant 1 : i32
    } else {
    }
    return
  }
  func.func @transform_0(%arg0: i32, %arg1: i32) -> (i32, i32, i32) {
    %c0_i32 = arith.constant 0 : i32
    %c0_i32_0 = arith.constant 0 : i32
    return %arg0, %arg1, %c0_i32 : i32, i32, i32
  }
  func.func @transform_1(%arg0: i32, %arg1: i32) -> (i32, i32) {
    %c0_i32 = arith.constant 0 : i32
    %c0_i32_0 = arith.constant 0 : i32
    %c0_i32_1 = arith.constant 0 : i32
    return %c0_i32, %c0_i32_0 : i32, i32
  }
  func.func @transform_2(%arg0: i32, %arg1: i32) -> (i32, i32, i32) {
    %c0_i32 = arith.constant 0 : i32
    %c0_i32_0 = arith.constant 0 : i32
    %c0_i32_1 = arith.constant 0 : i32
    return %arg0, %c0_i32, %c0_i32_0 : i32, i32, i32
  }
}

</mosaic_0001>

<bundles_post_ra>
// kernel: tpu_custom_call.1
= control target key start
LH: loop header
LB: loop body
LE: loop exit
PB: predicated region body
PF: predicated region fallthrough
CT: control target
= control target key end

     0   :  { %7 = vsyncpa [#allocation5], 0  ;;  %s4580_s0 = inlined_call_operand.hbm [shape: bf16[2,512,128], index: 0, kind: input, shape index: {}]   ;;  %s4581_s1 = inlined_call_operand.hbm [shape: bf16[128,128], index: 1, kind: input, shape index: {}]   ;;  %s4582_s2 = inlined_call_operand.hbm [shape: bf16[2,512,128], index: 2, kind: output, shape index: {}]  }
   0x1   :  { %9 = vsyncpa [#allocation5 + $0x1], 0 }
   0x2   :  { %10 = vsyncpa [#allocation8], 0 }
   0x3   :  { %11 = vsyncpa [#allocation6], 0 }
   0x4   :  { %13 = vsyncpa [#allocation6 + $0x1], 0  ;;  %s3391_s9 = smov 0   ;;  %s3393_s10 = smov 0  }
   0x5   :  { %s3395_s11 = smov 0   ;;  %s3397_s12 = smov 0  }
   0x6   :  { %s3399_s13 = smov 0   ;;  %s3401_s14 = smov 0  }
   0x7 LB: > { %s2116_s15 = sadd.s32 4294967295, %s3366_s14   ;;  %s2117_s16 = sadd.s32 4294967294, %s3366_s14   ;;  %s3366_s14 = sphi %s3401_s14, %s19_s14   ;;  %s3362_s13 = sphi %s3399_s13, %s4683_s13   ;;  %s3358_s12 = sphi %s3397_s12, %s4682_s12   ;;  %s3354_s11 = sphi %s3395_s11, %s4681_s11   ;;  %s3350_s10 = sphi %s3393_s10, %s4680_s10   ;;  %s3346_s9 = sphi %s3391_s9, %s4679_s9  }
   0x8   : > { %p53_p0 = scmp.ne.s32.totalorder %s3350_s10, %s3346_s9  ;;  %p3425_p1 = scmp.eq.s32.totalorder %s2116_s15, 0 }
   0x9   : > { %p3429_p2 = scmp.eq.s32.totalorder %s2116_s15, 1  ;;  %p104_p3 = scmp.eq.s32.totalorder %s2117_s16, 1 }
   0xa   : > { %p3435_p4 = por %p3425_p1, %p53_p0  ;;  %p2118_p5 = scmp.ge.s32.totalorder %s3366_s14, 1 }
   0xb   : > { %p3440_p6 = por %p104_p3, %p53_p0  ;;  %p111_p7 = scmp.lt.s32.totalorder %s3366_s14, 3 }
   0xc   : > { %s4588_s19 = scalar_select %p3435_p4, 1, 0 }
   0xd   : > { %s4589_s20 = scalar_select %p3440_p6, 1, 0 }
   0xe   : > { %p3445_p8 = pnand %p2118_p5, %p111_p7  ;;  %s3368_s22 = smov [#allocation7]  }
   0xf   : > { %s123_s23 = sshll.u32 %s3368_s22, 4  ;;  %s31_s25 = sadd.s32 1, %s3362_s13  ;;  %s124_s23 = int_to_ptr.vmem [resolvable:$true] %s123_s23 }
  0x10   : > { %p3116_p9 = pneg %p3445_p8  ;;  %s3239_s26 = scalar_lea.vmem %s124_s23, 1024 }
  0x11   : > { %p3240_p13 = scmp.ne.s32.totalorder %s124_s23, %s3239_s26  ;;  %p3247_p5 = scmp.lt.s32.totalorder %s124_s23, %s124_s23 }
  0x12   : > { %p3454_p11 = pnand %p3116_p9, %p3425_p1  ;;  %p3248_p7 = scmp.lt.s32.totalorder %s3239_s26, %s3239_s26 }
  0x14   : > { %p3230_p12 = pneg %p3454_p11  ;;  %p3249_p6 = por %p3248_p7, %p3247_p5 }
  0x16   : > { %p3242_p0 = pnand %p3240_p13, %p3230_p12 }
  0x18   : > { %p3243_p3 = pneg %p3242_p0 }
  0x1a   : > { %p3250_p4 = pnand %p3249_p6, %p3243_p3 }
  0x1c   : > { %3253 = shalt.err (!%p3250_p4)
}
  0x1d   : > { %s4584_s27 = smov 64   ;;  %s3370_s28 = smov 4  }
  0x1e   : > { %3119 = dma.hbm_to_vmem [thread:$0]  (!%p3454_p11), %s4581_s1, 1024, %s124_s23, [#allocation8], %s4584_s27, %s4584_s27, %s3370_s28  }
  0x1f   : > { %p33_p4 = scmp.ge.s32.totalorder %s31_s25, 2  ;;  %s40_s3 = sadd.s32 1, %s3354_s11 }
  0x20   : > { %p47_p6 = scmp.ne.s32.totalorder %s3354_s11, %s3350_s10  ;;  %p48_p9 = scmp.eq.s32.totalorder %s3366_s14, 0 }
  0x21   : > { %s4685_s25 = smov (%p33_p4, %s31_s25), 0  ;;  %p3129_p0 = scmp.lt.s32.totalorder %s3366_s14, 2 }
  0x22   : > { %p3475_p12 = por %p48_p9, %p47_p6  ;;  %p3481_p13 = por %p3429_p2, %p47_p6 }
  0x23   : > { %s35_s6 = ssub.s32 %s3362_s13, %s4685_s25  ;;  %s137_s7 = sand.u32 1, %s3354_s11  }
  0x24   : > { %p38_p11 = scmp.eq.s32.totalorder %s35_s6, 0  ;;  %s2121_s8 = sshll.u32 %s137_s7, 8 }
  0x25   : > { %s2301_s16 = sshll.u32 %s3362_s13, 12  ;;  %s141_s26 = scalar_lea.vmem [#allocation4], %s2121_s8 }
  0x26   : > { %s3490_s15 = scalar_select %p38_p11, %s3354_s11, %s40_s3  }
  0x27   : > { %s149_s24 = scalar_lea.hbm %s4580_s0, %s2301_s16  ;;  %s150_s29 = sshll.u32 %s141_s26, 4  ;;  %s151_s29 = int_to_ptr.vmem [resolvable:$true] %s150_s29 }
  0x28   : > { %p3498_p2 = pnand %p3129_p0, %p3475_p12  ;;  %s138_s30 = scalar_lea.sflag [#allocation5], %s137_s7 }
  0x29   : > { %s3267_s6 = scalar_lea.vmem %s151_s29, 4096  ;;  %s3371_s3 = smov [#allocation4]  }
  0x2a   : > { %p3256_p3 = pneg %p3498_p2  ;;  %p3268_p5 = scmp.ne.s32.totalorder %s151_s29, %s3267_s6 }
  0x2b   : > { %s3272_s27 = sshll.u32 %s3371_s3, 4  ;;  %s3273_s27 = int_to_ptr.vmem [resolvable:$false] %s3272_s27 }
  0x2c   : > { %p3270_p7 = pnand %p3268_p5, %p3256_p3  ;;  %s3274_s16 = scalar_lea.vmem %s3273_s27, 8192 }
  0x2d   : > { %p3275_p6 = scmp.lt.s32.totalorder %s151_s29, %s3273_s27  ;;  %p3276_p9 = scmp.lt.s32.totalorder %s3274_s16, %s3267_s6 }
  0x2e   : > { %p3271_p4 = pneg %p3270_p7 }
  0x2f   : > { %p3277_p11 = por %p3276_p9, %p3275_p6 }
  0x31   : > { %p3278_p10 = pnand %p3277_p11, %p3271_p4 }
  0x33   : > { %3281 = shalt.err (!%p3278_p10)
}
  0x34   : > { %s4595_s4 = smov 64   ;;  %162 = sbr.rel (%p3445_p8) target bundleno = 535 (0x217), region = 28 }
  0x35   : > { %3123 = dma.hbm_to_vmem [thread:$0]  (!%p3498_p2), %s149_s24, 4096, %s151_s29, %s138_s30, %s4595_s4, %s4595_s4, %s3370_s28  }
  0x39   : > { %s3512_s7 = sand.u32 1, %s3350_s10   ;;  %p4596_p10 = scmp.ne.s32.totalorder %s4588_s19, 0 }
  0x3a   : > { %s2125_s27 = sshll.u32 %s3512_s7, 8  ;;  %s165_s8 = scalar_lea.sflag [#allocation5], %s3512_s7 }
  0x3b   : > { %s3518_s22 = scalar_lea.vmem [#allocation4], %s2125_s27 }
  0x3c   : > { %3333 = dma.done.wait (%p4596_p10), %s165_s8, 4096  }
  0x3d   : > { %3335 = vsyncadd (%p4596_p10), %s165_s8, 4294963200 }
  0x3e   : > { %3337 = dma.done.wait (%p3425_p1), [#allocation8], 1024  }
  0x3f   : > { %3339 = vsyncadd (%p3425_p1), [#allocation8], 4294966272  ;;  %v3186_v0 = vld [vmem:[#allocation7 + $0x38] sm:$0xff]   ;;  %v3187_v1 = vld [vmem:[#allocation7 + $0x30] sm:$0xff]   ;;  %v3372_v42 = vmov 0.0   ;;  %s4257_s17 = scalar_lea.vmem [#allocation9], %s2125_s27 }
  0x40   : > { %3012 = vmatprep.subr.bf16.mxu0 %v3186_v0  ;;  %3092 = vmatprep.subr.bf16.mxu1 %v3186_v0  ;;  %v3188_v2 = vld [vmem:[#allocation7 + $0x28] sm:$0xff]   ;;  %v3189_v3 = vld [vmem:[#allocation7 + $0x20] sm:$0xff]   ;;  %v3190_v5 = vld [vmem:[#allocation7 + $0x18] sm:$0xff]   ;;  %199 = vst [vmem:[#allocation2] sm:$0x1] %v3372_v42  ;;  %s2430_s19 = sshll.u32 %s3358_s12, 12 }
  0x41   : > { %3013 = vmatpush3.bf16.msra.mxu0 %v3186_v0  ;;  %3100 = vmatpush3.bf16.msra.mxu1 %v3186_v0  ;;  %v3194_v4 = vld [vmem:[%s3518_s22] sm:$0xff]   ;;  %v3191_v6 = vld [vmem:[#allocation7 + $0x10] sm:$0xff]   ;;  %v3192_v7 = vld [vmem:[#allocation7 + $0x8] sm:$0xff]   ;;  %200 = vst [vmem:[#allocation3] sm:$0x1] %v3372_v42  ;;  %s2020_s21 = sshll.u32 %s4257_s17, 4  ;;  %s4518_s23 = scalar_lea.hbm %s4582_s2, %s2430_s19  ;;  %s4520_s21 = int_to_ptr.vmem [resolvable:$true] %s2020_s21 }
  0x42   : > { %3014 = vmatprep.subr.bf16.mxu0 %v3187_v1  ;;  %3093 = vmatprep.subr.bf16.mxu1 %v3187_v1  ;;  %v3193_v8 = vld [vmem:[#allocation7] sm:$0xff]   ;;  %v3195_v10 = vld [vmem:[%s3518_s22 + $0x8] sm:$0xff]   ;;  %v3196_v11 = vld [vmem:[%s3518_s22 + $0x10] sm:$0xff]   ;;  %s2007_s24 = scalar_lea.sflag [#allocation6], %s3512_s7  ;;  %s3282_s26 = scalar_lea.vmem %s4520_s21, 4096 }
  0x43   : > { %3028 = vmatprep.mubr.bf16.mxu0 %v3194_v4  ;;  %v3210_v9 = vld [vmem:[%s3518_s22 + $0x80] sm:$0xff]   ;;  %v3211_v12 = vld [vmem:[%s3518_s22 + $0x88] sm:$0xff]   ;;  %v3212_v13 = vld [vmem:[%s3518_s22 + $0x90] sm:$0xff]   ;;  %p3283_p1 = scmp.ne.s32.totalorder %s4520_s21, %s3282_s26  ;;  %s3373_s29 = smov [#allocation9]  }
  0x44   : > { %3060 = vmatprep.mubr.bf16.mxu1 %v3210_v9  ;;  %v3197_v14 = vld [vmem:[%s3518_s22 + $0x18] sm:$0xff]   ;;  %v3198_v15 = vld [vmem:[%s3518_s22 + $0x20] sm:$0xff]   ;;  %v3199_v18 = vld [vmem:[%s3518_s22 + $0x28] sm:$0xff]   ;;  %s3286_s18 = sshll.u32 %s3373_s29, 4  ;;  %s3287_s18 = int_to_ptr.vmem [resolvable:$false] %s3286_s18 }
  0x45   : > { %3015 = vmatpush3.bf16.msra.mxu0 %v3187_v1  ;;  %3101 = vmatpush3.bf16.msra.mxu1 %v3187_v1  ;;  %v3213_v16 = vld [vmem:[%s3518_s22 + $0x98] sm:$0xff]   ;;  %v3214_v17 = vld [vmem:[%s3518_s22 + $0xa0] sm:$0xff]   ;;  %v3215_v19 = vld [vmem:[%s3518_s22 + $0xa8] sm:$0xff]   ;;  %p3284_p8 = pnand %p3283_p1, %p3481_p13  ;;  %s3288_s30 = scalar_lea.vmem %s3287_s18, 8192 }
  0x46   : > { %3016 = vmatprep.subr.bf16.mxu0 %v3188_v2  ;;  %3094 = vmatprep.subr.bf16.mxu1 %v3188_v2  ;;  %v3200_v20 = vld [vmem:[%s3518_s22 + $0x30] sm:$0xff]   ;;  %v3201_v22 = vld [vmem:[%s3518_s22 + $0x38] sm:$0xff]   ;;  %v3202_v24 = vld [vmem:[%s3518_s22 + $0x40] sm:$0xff]   ;;  %p3289_p0 = scmp.lt.s32.totalorder %s4520_s21, %s3287_s18  ;;  %p3290_p2 = scmp.lt.s32.totalorder %s3288_s30, %s3282_s26 }
  0x47   : > { %v3216_v21 = vld [vmem:[%s3518_s22 + $0xb0] sm:$0xff]   ;;  %v3217_v23 = vld [vmem:[%s3518_s22 + $0xb8] sm:$0xff]   ;;  %v3218_v25 = vld [vmem:[%s3518_s22 + $0xc0] sm:$0xff]   ;;  %p3285_p12 = pneg %p3284_p8 }
  0x48   : > { %v3203_v26 = vld [vmem:[%s3518_s22 + $0x48] sm:$0xff]   ;;  %v3204_v28 = vld [vmem:[%s3518_s22 + $0x50] sm:$0xff]   ;;  %v3205_v30 = vld [vmem:[%s3518_s22 + $0x58] sm:$0xff]   ;;  %p3291_p3 = por %p3290_p2, %p3289_p0 }
  0x49   : > { %3017 = vmatpush3.bf16.msra.mxu0 %v3188_v2  ;;  %3102 = vmatpush3.bf16.msra.mxu1 %v3188_v2  ;;  %v3219_v27 = vld [vmem:[%s3518_s22 + $0xc8] sm:$0xff]   ;;  %v3220_v29 = vld [vmem:[%s3518_s22 + $0xd0] sm:$0xff]   ;;  %v3221_v31 = vld [vmem:[%s3518_s22 + $0xd8] sm:$0xff]  }
  0x4a   : > { %3018 = vmatprep.subr.bf16.mxu0 %v3189_v3  ;;  %3095 = vmatprep.subr.bf16.mxu1 %v3189_v3  ;;  %v3206_v32 = vld [vmem:[%s3518_s22 + $0x60] sm:$0xff]   ;;  %v3207_v34 = vld [vmem:[%s3518_s22 + $0x68] sm:$0xff]   ;;  %v3208_v36 = vld [vmem:[%s3518_s22 + $0x70] sm:$0xff]   ;;  %p3292_p5 = pnand %p3291_p3, %p3285_p12 }
  0x4b   : > { %v3222_v33 = vld [vmem:[%s3518_s22 + $0xe0] sm:$0xff]   ;;  %v3223_v35 = vld [vmem:[%s3518_s22 + $0xe8] sm:$0xff]   ;;  %v3224_v37 = vld [vmem:[%s3518_s22 + $0xf0] sm:$0xff]  }
  0x4c   : > { %v3209_v38 = vld [vmem:[%s3518_s22 + $0x78] sm:$0xff]  }
  0x4d   : > { %3019 = vmatpush3.bf16.msra.mxu0 %v3189_v3  ;;  %3103 = vmatpush3.bf16.msra.mxu1 %v3189_v3  ;;  %v3225_v39 = vld [vmem:[%s3518_s22 + $0xf8] sm:$0xff]  }
  0x4e   : > { %3020 = vmatprep.subr.bf16.mxu0 %v3190_v5  ;;  %3096 = vmatprep.subr.bf16.mxu1 %v3190_v5 }
  0x51   : > { %3021 = vmatpush3.bf16.msra.mxu0 %v3190_v5  ;;  %3104 = vmatpush3.bf16.msra.mxu1 %v3190_v5 }
  0x52   : > { %3022 = vmatprep.subr.bf16.mxu0 %v3191_v6  ;;  %3097 = vmatprep.subr.bf16.mxu1 %v3191_v6 }
  0x55   : > { %3023 = vmatpush3.bf16.msra.mxu0 %v3191_v6  ;;  %3105 = vmatpush3.bf16.msra.mxu1 %v3191_v6 }
  0x56   : > { %3024 = vmatprep.subr.bf16.mxu0 %v3192_v7  ;;  %3098 = vmatprep.subr.bf16.mxu1 %v3192_v7 }
  0x59   : > { %3025 = vmatpush3.bf16.msra.mxu0 %v3192_v7  ;;  %3106 = vmatpush3.bf16.msra.mxu1 %v3192_v7 }
  0x5a   : > { %3026 = vmatprep.subr.bf16.mxu0 %v3193_v8  ;;  %3099 = vmatprep.subr.bf16.mxu1 %v3193_v8 }
  0x5d   : > { %3027 = vmatpush3.bf16.msra.mxu0 %v3193_v8  ;;  %3107 = vmatpush3.bf16.msra.mxu1 %v3193_v8 }
  0x60   : > { %3029 = vmatmul.mubr.bf16.vlgmr.msra.gmra.mxu0 %v3195_v10  ;;  %3061 = vmatmul.mubr.bf16.vlgmr.msra.gmra.mxu1 %v3211_v12 }
  0x61   : > { %3032 = vmatprep.mubr.bf16.mxu0 %v3196_v11  ;;  %3064 = vmatprep.mubr.bf16.mxu1 %v3212_v13 }
  0x68   : > { %3033 = vmatmul.mubr.bf16.gmra.mxu0 %v3197_v14  ;;  %3065 = vmatmul.mubr.bf16.gmra.mxu1 %v3213_v16 }
  0x69   : > { %3036 = vmatprep.mubr.bf16.mxu0 %v3198_v15  ;;  %3068 = vmatprep.mubr.bf16.mxu1 %v3214_v17 }
  0x70   : > { %3037 = vmatmul.mubr.bf16.gmra.mxu0 %v3199_v18  ;;  %3069 = vmatmul.mubr.bf16.gmra.mxu1 %v3215_v19 }
  0x71   : > { %3040 = vmatprep.mubr.bf16.mxu0 %v3200_v20  ;;  %3072 = vmatprep.mubr.bf16.mxu1 %v3216_v21 }
  0x78   : > { %3041 = vmatmul.mubr.bf16.gmra.mxu0 %v3201_v22  ;;  %3073 = vmatmul.mubr.bf16.gmra.mxu1 %v3217_v23 }
  0x79   : > { %3044 = vmatprep.mubr.bf16.mxu0 %v3202_v24  ;;  %3076 = vmatprep.mubr.bf16.mxu1 %v3218_v25 }
  0x80   : > { %3045 = vmatmul.mubr.bf16.gmra.mxu0 %v3203_v26  ;;  %3077 = vmatmul.mubr.bf16.gmra.mxu1 %v3219_v27 }
  0x81   : > { %3048 = vmatprep.mubr.bf16.mxu0 %v3204_v28  ;;  %3080 = vmatprep.mubr.bf16.mxu1 %v3220_v29 }
  0x88   : > { %3049 = vmatmul.mubr.bf16.gmra.mxu0 %v3205_v30  ;;  %3081 = vmatmul.mubr.bf16.gmra.mxu1 %v3221_v31 }
  0x89   : > { %3052 = vmatprep.mubr.bf16.mxu0 %v3206_v32  ;;  %3084 = vmatprep.mubr.bf16.mxu1 %v3222_v33 }
  0x90   : > { %3053 = vmatmul.mubr.bf16.gmra.mxu0 %v3207_v34  ;;  %3085 = vmatmul.mubr.bf16.gmra.mxu1 %v3223_v35 }
  0x91   : > { %3056 = vmatprep.mubr.bf16.mxu0 %v3208_v36  ;;  %3088 = vmatprep.mubr.bf16.mxu1 %v3224_v37 }
  0x98   : > { %3057 = vmatmul.mubr.bf16.gmra.mxu0 %v3209_v38  ;;  %3089 = vmatmul.mubr.bf16.gmra.mxu1 %v3225_v39 }
 0x120   : > { %v3030_v40 = vpop.f32.mrf.mxu0  ;;  %v3560_v41 = vpop.f32.mrf.mxu1 }
 0x121   : > { %v885_v53 = vmul.f32 %v3030_v40, %v3030_v40 }
 0x122   : > { %v555_v43 = vpop.f32.mrf.mxu0  ;;  %v3564_v46 = vpop.f32.mrf.mxu1 }
 0x123   : > { %v883_v48 = vmul.f32 %v555_v43, %v555_v43 }
 0x124   : > { %v3031_v44 = vpop.f32.mrf.mxu0  ;;  %v3568_v56 = vpop.f32.mrf.mxu1 }
 0x125   : > { %v3562_v45 = vpack.c.bf16 %v3031_v44, %v3030_v40  ;;  %v886_v58 = vmul.f32 %v3031_v44, %v3031_v44 }
 0x126   : > { %v558_v47 = vpop.f32.mrf.mxu0  ;;  %v3572_v2 = vpop.f32.mrf.mxu1 }
 0x127   : > { %v811_v49 = vadd.f32 %v558_v47, %v555_v43  ;;  %v884_v50 = vmul.f32 %v558_v47, %v558_v47  ;;  %v3566_v51 = vpack.c.bf16 %v558_v47, %v555_v43 }
 0x128   : > { %v3034_v52 = vpop.f32.mrf.mxu0  ;;  %v3576_v10 = vpop.f32.mrf.mxu1 }
 0x129   : > { %v812_v54 = vadd.f32 %v3030_v40, %v811_v49  ;;  %v947_v55 = vadd.f32 %v884_v50, %v883_v48  ;;  %v889_v11 = vmul.f32 %v3034_v52, %v3034_v52 }
 0x12a   : > { %v571_v57 = vpop.f32.mrf.mxu0  ;;  %v3580_v20 = vpop.f32.mrf.mxu1 }
 0x12b   : > { %v948_v59 = vadd.f32 %v947_v55, %v885_v53  ;;  %v813_v60 = vadd.f32 %v3031_v44, %v812_v54  ;;  %v887_v63 = vmul.f32 %v571_v57, %v571_v57 }
 0x12c   : > { %v3035_v61 = vpop.f32.mrf.mxu0  ;;  %v3584_v30 = vpop.f32.mrf.mxu1 }
 0x12d   : > { %v814_v62 = vadd.f32 %v813_v60, %v571_v57  ;;  %v949_v0 = vadd.f32 %v948_v59, %v886_v58  ;;  %v3570_v1 = vpack.c.bf16 %v3035_v61, %v3034_v52  ;;  %v890_v15 = vmul.f32 %v3035_v61, %v3035_v61 }
 0x12e   : > { %v574_v3 = vpop.f32.mrf.mxu0  ;;  %v3588_v40 = vpop.f32.mrf.mxu1 }
 0x12f   : > { %v950_v4 = vadd.f32 %v949_v0, %v887_v63  ;;  %v815_v5 = vadd.f32 %v814_v62, %v574_v3  ;;  %v888_v6 = vmul.f32 %v574_v3, %v574_v3  ;;  %v3574_v7 = vpack.c.bf16 %v574_v3, %v571_v57 }
 0x130   : > { %v3038_v8 = vpop.f32.mrf.mxu0  ;;  %v3592_v54 = vpop.f32.mrf.mxu1 }
 0x131   : > { %v816_v9 = vadd.f32 %v3034_v52, %v815_v5  ;;  %v951_v12 = vadd.f32 %v950_v4, %v888_v6  ;;  %v893_v31 = vmul.f32 %v3038_v8, %v3038_v8 }
 0x132   : > { %v587_v13 = vpop.f32.mrf.mxu0  ;;  %v3596_v3 = vpop.f32.mrf.mxu1 }
 0x133   : > { %v817_v14 = vadd.f32 %v3035_v61, %v816_v9  ;;  %v952_v16 = vadd.f32 %v951_v12, %v889_v11  ;;  %v891_v21 = vmul.f32 %v587_v13, %v587_v13 }
 0x134   : > { %v3039_v17 = vpop.f32.mrf.mxu0 }
 0x135   : > { %v818_v18 = vadd.f32 %v817_v14, %v587_v13  ;;  %v3578_v19 = vpack.c.bf16 %v3039_v17, %v3038_v8  ;;  %v953_v22 = vadd.f32 %v952_v16, %v890_v15  ;;  %v894_v35 = vmul.f32 %v3039_v17, %v3039_v17  ;;  %v3600_v15 = vpop.f32.mrf.mxu1 }
 0x136   : > { %v590_v23 = vpop.f32.mrf.mxu0 }
 0x137   : > { %v819_v24 = vadd.f32 %v818_v18, %v590_v23  ;;  %v892_v25 = vmul.f32 %v590_v23, %v590_v23  ;;  %v954_v26 = vadd.f32 %v953_v22, %v891_v21  ;;  %v3582_v27 = vpack.c.bf16 %v590_v23, %v587_v13 }
 0x138   : > { %v3042_v28 = vpop.f32.mrf.mxu0 }
 0x139   : > { %v820_v29 = vadd.f32 %v3038_v8, %v819_v24  ;;  %v955_v32 = vadd.f32 %v954_v26, %v892_v25  ;;  %v897_v55 = vmul.f32 %v3042_v28, %v3042_v28 }
 0x13a   : > { %v603_v33 = vpop.f32.mrf.mxu0 }
 0x13b   : > { %v821_v34 = vadd.f32 %v3039_v17, %v820_v29  ;;  %v956_v36 = vadd.f32 %v955_v32, %v893_v31  ;;  %v895_v42 = vmul.f32 %v603_v33, %v603_v33 }
 0x13c   : > { %v3043_v37 = vpop.f32.mrf.mxu0 }
 0x13d   : > { %v822_v38 = vadd.f32 %v821_v34, %v603_v33  ;;  %v3586_v39 = vpack.c.bf16 %v3043_v37, %v3042_v28  ;;  %v957_v43 = vadd.f32 %v956_v36, %v894_v35  ;;  %v898_v60 = vmul.f32 %v3043_v37, %v3043_v37 }
 0x13e   : > { %v606_v44 = vpop.f32.mrf.mxu0 }
 0x13f   : > { %v823_v47 = vadd.f32 %v822_v38, %v606_v44  ;;  %v896_v48 = vmul.f32 %v606_v44, %v606_v44  ;;  %v958_v49 = vadd.f32 %v957_v43, %v895_v42  ;;  %v3590_v50 = vpack.c.bf16 %v606_v44, %v603_v33 }
 0x140   : > { %v3046_v52 = vpop.f32.mrf.mxu0 }
 0x141   : > { %v824_v53 = vadd.f32 %v3042_v28, %v823_v47  ;;  %v959_v57 = vadd.f32 %v958_v49, %v896_v48  ;;  %v901_v16 = vmul.f32 %v3046_v52, %v3046_v52  ;;  %v3604_v28 = vpop.f32.mrf.mxu1 }
 0x142   : > { %v619_v58 = vpop.f32.mrf.mxu0 }
 0x143   : > { %v825_v59 = vadd.f32 %v3043_v37, %v824_v53  ;;  %v960_v61 = vadd.f32 %v959_v57, %v897_v55  ;;  %v899_v4 = vmul.f32 %v619_v58, %v619_v58  ;;  %v3608_v42 = vpop.f32.mrf.mxu1 }
 0x144   : > { %v3047_v62 = vpop.f32.mrf.mxu0 }
 0x145   : > { %v826_v63 = vadd.f32 %v825_v59, %v619_v58  ;;  %v3594_v0 = vpack.c.bf16 %v3047_v62, %v3046_v52  ;;  %v961_v5 = vadd.f32 %v960_v61, %v898_v60  ;;  %v902_v22 = vmul.f32 %v3047_v62, %v3047_v62 }
 0x146   : > { %v622_v6 = vpop.f32.mrf.mxu0 }
 0x147   : > { %v827_v8 = vadd.f32 %v826_v63, %v622_v6  ;;  %v900_v9 = vmul.f32 %v622_v6, %v622_v6  ;;  %v962_v11 = vadd.f32 %v961_v5, %v899_v4  ;;  %v3598_v12 = vpack.c.bf16 %v622_v6, %v619_v58  ;;  %v3612_v58 = vpop.f32.mrf.mxu1 }
 0x148   : > { %v3050_v13 = vpop.f32.mrf.mxu0 }
 0x149   : > { %v828_v14 = vadd.f32 %v3046_v52, %v827_v8  ;;  %v963_v17 = vadd.f32 %v962_v11, %v900_v9  ;;  %v905_v43 = vmul.f32 %v3050_v13, %v3050_v13  ;;  %v3616_v9 = vpop.f32.mrf.mxu1 }
 0x14a   : > { %v635_v18 = vpop.f32.mrf.mxu0 }
 0x14b   : > { %v829_v21 = vadd.f32 %v3047_v62, %v828_v14  ;;  %v964_v23 = vadd.f32 %v963_v17, %v901_v16  ;;  %v903_v29 = vmul.f32 %v635_v18, %v635_v18 }
 0x14c   : > { %v3051_v24 = vpop.f32.mrf.mxu0 }
 0x14d   : > { %v830_v25 = vadd.f32 %v829_v21, %v635_v18  ;;  %v3602_v26 = vpack.c.bf16 %v3051_v24, %v3050_v13  ;;  %v965_v31 = vadd.f32 %v964_v23, %v902_v22  ;;  %v906_v49 = vmul.f32 %v3051_v24, %v3051_v24 }
 0x14e   : > { %v638_v32 = vpop.f32.mrf.mxu0 }
 0x14f   : > { %v831_v33 = vadd.f32 %v830_v25, %v638_v32  ;;  %v904_v34 = vmul.f32 %v638_v32, %v638_v32  ;;  %v966_v35 = vadd.f32 %v965_v31, %v903_v29  ;;  %v3606_v36 = vpack.c.bf16 %v638_v32, %v635_v18 }
 0x150   : > { %v3054_v37 = vpop.f32.mrf.mxu0 }
 0x151   : > { %v832_v38 = vadd.f32 %v3050_v13, %v831_v33  ;;  %v967_v44 = vadd.f32 %v966_v35, %v904_v34  ;;  %v909_v11 = vmul.f32 %v3054_v37, %v3054_v37 }
 0x152   : > { %v651_v47 = vpop.f32.mrf.mxu0 }
 0x153   : > { %v833_v48 = vadd.f32 %v3051_v24, %v832_v38  ;;  %v968_v52 = vadd.f32 %v967_v44, %v905_v43  ;;  %v907_v59 = vmul.f32 %v651_v47, %v651_v47  ;;  %v3620_v24 = vpop.f32.mrf.mxu1 }
 0x154   : > { %v3055_v53 = vpop.f32.mrf.mxu0 }
 0x155   : > { %v834_v55 = vadd.f32 %v833_v48, %v651_v47  ;;  %v3610_v57 = vpack.c.bf16 %v3055_v53, %v3054_v37  ;;  %v969_v60 = vadd.f32 %v968_v52, %v906_v49  ;;  %v910_v17 = vmul.f32 %v3055_v53, %v3055_v53  ;;  %v3624_v38 = vpop.f32.mrf.mxu1 }
 0x156   : > { %v654_v61 = vpop.f32.mrf.mxu0 }
 0x157   : > { %v835_v62 = vadd.f32 %v834_v55, %v654_v61  ;;  %v908_v63 = vmul.f32 %v654_v61, %v654_v61  ;;  %v970_v4 = vadd.f32 %v969_v60, %v907_v59  ;;  %v3614_v5 = vpack.c.bf16 %v654_v61, %v651_v47 }
 0x158   : > { %v3058_v6 = vpop.f32.mrf.mxu0  ;;  %v915_v55 = vmul.f32 %v3564_v46, %v3564_v46  ;;  %v916_v61 = vmul.f32 %v3572_v2, %v3572_v2 }
 0x159   : > { %v836_v8 = vadd.f32 %v3054_v37, %v835_v62  ;;  %v971_v13 = vadd.f32 %v970_v4, %v908_v63  ;;  %v913_v43 = vmul.f32 %v3058_v6, %v3058_v6 }
 0x15a   : > { %v667_v14 = vpop.f32.mrf.mxu0 }
 0x15b   : > { %v837_v16 = vadd.f32 %v3055_v53, %v836_v8  ;;  %v972_v18 = vadd.f32 %v971_v13, %v909_v11  ;;  %v911_v25 = vmul.f32 %v667_v14, %v667_v14  ;;  %v3627_v53 = vpop.f32.mrf.mxu1  ;;  %v918_v13 = vmul.f32 %v3568_v56, %v3568_v56 }
 0x15c   : > { %v3059_v21 = vpop.f32.mrf.mxu0 }
 0x15d   : > { %v838_v22 = vadd.f32 %v837_v16, %v667_v14  ;;  %v3618_v23 = vpack.c.bf16 %v3059_v21, %v3058_v6  ;;  %v973_v29 = vadd.f32 %v972_v18, %v910_v17  ;;  %v914_v48 = vmul.f32 %v3059_v21, %v3059_v21  ;;  %v3635_v4 = vpop.f32.mrf.mxu1 }
 0x15e   : > { %v670_v31 = vpop.f32.mrf.mxu0  ;;  %v919_v18 = vmul.f32 %v3580_v20, %v3580_v20 }
 0x15f   : > { %v839_v32 = vadd.f32 %v838_v22, %v670_v31  ;;  %v912_v33 = vmul.f32 %v670_v31, %v670_v31  ;;  %v974_v34 = vadd.f32 %v973_v29, %v911_v25  ;;  %v3622_v35 = vpack.c.bf16 %v670_v31, %v667_v14  ;;  %v3643_v17 = vpop.f32.mrf.mxu1 }
 0x160   : > { %v920_v29 = vmul.f32 %v3588_v40, %v3588_v40 }
 0x161   : > { %v840_v37 = vadd.f32 %v3058_v6, %v839_v32  ;;  %v975_v44 = vadd.f32 %v974_v34, %v912_v33  ;;  %v917_v6 = vmul.f32 %v3560_v41, %v3560_v41  ;;  %v3651_v32 = vpop.f32.mrf.mxu1  ;;  %v921_v33 = vmul.f32 %v3576_v10, %v3576_v10 }
 0x163   : > { %v841_v47 = vadd.f32 %v3059_v21, %v840_v37  ;;  %v976_v49 = vadd.f32 %v975_v44, %v913_v43  ;;  %v922_v43 = vmul.f32 %v3584_v30, %v3584_v30 }
 0x165   : > { %v842_v52 = vadd.f32 %v841_v47, %v3564_v46  ;;  %v977_v59 = vadd.f32 %v976_v49, %v914_v48  ;;  %v3659_v48 = vpop.f32.mrf.mxu1  ;;  %v923_v49 = vmul.f32 %v3596_v3, %v3596_v3 }
 0x167   : > { %v843_v60 = vadd.f32 %v842_v52, %v3572_v2  ;;  %v978_v62 = vadd.f32 %v977_v59, %v915_v55 }
 0x169   : > { %v844_v63 = vadd.f32 %v3560_v41, %v843_v60  ;;  %v979_v8 = vadd.f32 %v978_v62, %v916_v61  ;;  %v924_v60 = vmul.f32 %v3604_v28, %v3604_v28  ;;  %v3667_v62 = vpop.f32.mrf.mxu1 }
 0x16b   : > { %v845_v11 = vadd.f32 %v3568_v56, %v844_v63  ;;  %v980_v14 = vadd.f32 %v979_v8, %v917_v6  ;;  %v925_v63 = vmul.f32 %v3592_v54, %v3592_v54 }
 0x16d   : > { %v846_v16 = vadd.f32 %v845_v11, %v3580_v20  ;;  %v981_v21 = vadd.f32 %v980_v14, %v918_v13  ;;  %v926_v11 = vmul.f32 %v3600_v15, %v3600_v15 }
 0x16f   : > { %v847_v22 = vadd.f32 %v846_v16, %v3588_v40  ;;  %v982_v25 = vadd.f32 %v981_v21, %v919_v18  ;;  %v3675_v16 = vpop.f32.mrf.mxu1  ;;  %v927_v18 = vmul.f32 %v3612_v58, %v3612_v58 }
 0x171   : > { %v848_v31 = vadd.f32 %v3576_v10, %v847_v22  ;;  %v983_v34 = vadd.f32 %v982_v25, %v920_v29  ;;  %v928_v29 = vmul.f32 %v3620_v24, %v3620_v24 }
 0x173   : > { %v849_v37 = vadd.f32 %v3584_v30, %v848_v31  ;;  %v984_v44 = vadd.f32 %v983_v34, %v921_v33  ;;  %v3683_v33 = vpop.f32.mrf.mxu1  ;;  %v929_v34 = vmul.f32 %v3608_v42, %v3608_v42 }
 0x175   : > { %v850_v47 = vadd.f32 %v849_v37, %v3596_v3  ;;  %v985_v52 = vadd.f32 %v984_v44, %v922_v43  ;;  %v930_v44 = vmul.f32 %v3616_v9, %v3616_v9 }
 0x177   : > { %v851_v55 = vadd.f32 %v850_v47, %v3604_v28  ;;  %v986_v59 = vadd.f32 %v985_v52, %v923_v49  ;;  %v3691_v52 = vpop.f32.mrf.mxu1 }
 0x179   : > { %v852_v61 = vadd.f32 %v3592_v54, %v851_v55  ;;  %v987_v6 = vadd.f32 %v986_v59, %v924_v60  ;;  %v931_v55 = vmul.f32 %v3627_v53, %v3627_v53 }
 0x17b   : > { %v853_v8 = vadd.f32 %v3600_v15, %v852_v61  ;;  %v988_v13 = vadd.f32 %v987_v6, %v925_v63  ;;  %v932_v63 = vmul.f32 %v3643_v17, %v3643_v17 }
 0x17d   : > { %v854_v14 = vadd.f32 %v853_v8, %v3612_v58  ;;  %v989_v21 = vadd.f32 %v988_v13, %v926_v11  ;;  %v3699_v8 = vpop.f32.mrf.mxu1  ;;  %v933_v11 = vmul.f32 %v3624_v38, %v3624_v38 }
 0x17f   : > { %v855_v22 = vadd.f32 %v854_v14, %v3620_v24  ;;  %v990_v25 = vadd.f32 %v989_v21, %v927_v18  ;;  %v934_v18 = vmul.f32 %v3635_v4, %v3635_v4 }
 0x181   : > { %v856_v31 = vadd.f32 %v3608_v42, %v855_v22  ;;  %v991_v37 = vadd.f32 %v990_v25, %v928_v29  ;;  %v3707_v25 = vpop.f32.mrf.mxu1  ;;  %v935_v29 = vmul.f32 %v3659_v48, %v3659_v48 }
 0x183   : > { %v857_v43 = vadd.f32 %v3616_v9, %v856_v31  ;;  %v992_v47 = vadd.f32 %v991_v37, %v929_v34 }
 0x185   : > { %v858_v49 = vadd.f32 %v857_v43, %v3627_v53  ;;  %v993_v59 = vadd.f32 %v992_v47, %v930_v44  ;;  %v936_v43 = vmul.f32 %v3675_v16, %v3675_v16  ;;  %v3715_v47 = vpop.f32.mrf.mxu1 }
 0x187   : > { %v859_v60 = vadd.f32 %v858_v49, %v3643_v17  ;;  %v994_v61 = vadd.f32 %v993_v59, %v931_v55  ;;  %v937_v49 = vmul.f32 %v3651_v32, %v3651_v32 }
 0x189   : > { %v860_v6 = vadd.f32 %v3624_v38, %v859_v60  ;;  %v995_v13 = vadd.f32 %v994_v61, %v932_v63  ;;  %v938_v60 = vmul.f32 %v3667_v62, %v3667_v62 }
 0x18b   : > { %v861_v14 = vadd.f32 %v3635_v4, %v860_v6  ;;  %v996_v21 = vadd.f32 %v995_v13, %v933_v11  ;;  %v3723_v6 = vpop.f32.mrf.mxu1  ;;  %v939_v11 = vmul.f32 %v3691_v52, %v3691_v52 }
 0x18d   : > { %v862_v22 = vadd.f32 %v861_v14, %v3659_v48  ;;  %v997_v31 = vadd.f32 %v996_v21, %v934_v18  ;;  %v940_v21 = vmul.f32 %v3707_v25, %v3707_v25 }
 0x18f   : > { %v863_v34 = vadd.f32 %v862_v22, %v3675_v16  ;;  %v998_v37 = vadd.f32 %v997_v31, %v935_v29  ;;  %v3731_v29 = vpop.f32.mrf.mxu1  ;;  %v941_v31 = vmul.f32 %v3683_v33, %v3683_v33 }
 0x191   : > { %v864_v44 = vadd.f32 %v3651_v32, %v863_v34  ;;  %v999_v55 = vadd.f32 %v998_v37, %v936_v43  ;;  %v942_v43 = vmul.f32 %v3699_v8, %v3699_v8 }
 0x193   : > { %v865_v59 = vadd.f32 %v3667_v62, %v864_v44  ;;  %v1000_v61 = vadd.f32 %v999_v55, %v937_v49  ;;  %v3739_v55 = vpop.f32.mrf.mxu1 }
 0x195   : > { %v866_v63 = vadd.f32 %v865_v59, %v3691_v52  ;;  %v1001_v13 = vadd.f32 %v1000_v61, %v938_v60  ;;  %v943_v59 = vmul.f32 %v3723_v6, %v3723_v6 }
 0x197   : > { %v867_v14 = vadd.f32 %v866_v63, %v3707_v25  ;;  %v1002_v18 = vadd.f32 %v1001_v13, %v939_v11  ;;  %v944_v11 = vmul.f32 %v3739_v55, %v3739_v55 }
 0x199   : > { %v868_v22 = vadd.f32 %v3683_v33, %v867_v14  ;;  %v1003_v34 = vadd.f32 %v1002_v18, %v940_v21  ;;  %v945_v14 = vmul.f32 %v3715_v47, %v3715_v47 }
 0x19b   : > { %v869_v37 = vadd.f32 %v3699_v8, %v868_v22  ;;  %v1004_v44 = vadd.f32 %v1003_v34, %v941_v31  ;;  %v946_v22 = vmul.f32 %v3731_v29, %v3731_v29 }
 0x19d   : > { %v870_v49 = vadd.f32 %v869_v37, %v3723_v6  ;;  %v1005_v60 = vadd.f32 %v1004_v44, %v942_v43  ;;  %v3754_v44 = vpack.c.bf16 %v3568_v56, %v3560_v41  ;;  %v2593_v56 = vunpack.c.l.bf16 %v3566_v51 }
 0x19f   : > { %v871_v61 = vadd.f32 %v870_v49, %v3739_v55  ;;  %v1006_v63 = vadd.f32 %v1005_v60, %v943_v59  ;;  %v3758_v60 = vpack.c.bf16 %v3572_v2, %v3564_v46  ;;  %v2614_v46 = vunpack.c.h.bf16 %v3578_v19 }
 0x1a1   : > { %v872_v13 = vadd.f32 %v3715_v47, %v871_v61  ;;  %v1007_v18 = vadd.f32 %v1006_v63, %v944_v11  ;;  %v2597_v63 = vunpack.c.l.bf16 %v3562_v45 }
 0x1a3   : > { %v873_v21 = vadd.f32 %v3731_v29, %v872_v13  ;;  %v1008_v31 = vadd.f32 %v1007_v18, %v945_v14  ;;  %v2598_v13 = vunpack.c.h.bf16 %v3562_v45  ;;  %v3765_v18 = vpack.c.bf16 %v3584_v30, %v3576_v10  ;;  %v882_v30 = vld [vmem:[#allocation3] sm:$0x1] }
 0x1a4   : > { %v2613_v14 = vunpack.c.l.bf16 %v3578_v19  ;;  %v2626_v10 = vunpack.c.h.bf16 %v3598_v12  ;;  %v4598_v45 = vunpack.c.h.bf16 %v3570_v1  ;;  %v4601_v19 = vunpack.c.h.bf16 %v3586_v39 }
 0x1a5   : > { %v874_v34 = vrot.slane %v873_v21, 4  ;;  %v1009_v37 = vadd.f32 %v1008_v31, %v946_v22  ;;  %v1483_v22 = vlaneseq }
 0x1a7   : > { %v875_v43 = vadd.f32 %v874_v34, %v873_v21  ;;  %v1010_v49 = vrot.slane %v1009_v37, 4  ;;  %v2594_v21 = vunpack.c.h.bf16 %v3566_v51  ;;  %v3774_v34 = vpack.c.bf16 %v3588_v40, %v3580_v20 }
 0x1a8   : > { %v2601_v20 = vunpack.c.l.bf16 %v3574_v7  ;;  %v2602_v40 = vunpack.c.h.bf16 %v3574_v7 }
 0x1a9   : > { %v876_v59 = vrot.slane %v875_v43, 2  ;;  %v1011_v61 = vadd.f32 %v1010_v49, %v1009_v37  ;;  %v810_v37 = vld [vmem:[#allocation2] sm:$0x1]  ;;  %v3780_v49 = vpack.c.bf16 %v3600_v15, %v3592_v54  ;;  %v3805_v15 = vshrl.u32 %v1483_v22, 7 }
 0x1aa   : > { %v3819_v22 = vpack.c.bf16 %v3643_v17, %v3627_v53  ;;  %v2637_v54 = vunpack.c.l.bf16 %v3602_v26  ;;  %v2638_v17 = vunpack.c.h.bf16 %v3602_v26  ;;  %v2584_v26 = vpack.c.bf16 %v3739_v55, %v3723_v6 }
 0x1ab   : > { %v877_v11 = vadd.f32 %v876_v59, %v875_v43  ;;  %v1012_v41 = vrot.slane %v1011_v61, 2  ;;  %v4585_v53 = vsub.s32 0, %v3805_v15  ;;  %v2641_v55 = vunpack.c.l.bf16 %v3614_v5 }
 0x1ad   : > { %v878_v2 = vrot.slane %v877_v11, 1  ;;  %v1013_v43 = vadd.f32 %v1012_v41, %v1011_v61  ;;  %v3788_v61 = vpack.c.bf16 %v3604_v28, %v3596_v3  ;;  %v3801_v3 = vpack.c.bf16 %v3620_v24, %v3612_v58 }
 0x1ae   : > { %v2609_v28 = vunpack.c.l.bf16 %v3582_v27 }
 0x1af   : > { %v879_v59 = vadd.f32 %v878_v2, %v877_v11  ;;  %v1014_v31 = vrot.slane %v1013_v43, 1  ;;  %v3794_v11 = vpack.c.bf16 %v3616_v9, %v3608_v42  ;;  %v2610_v42 = vunpack.c.h.bf16 %v3582_v27 }
 0x1b0   : > { %v3854_v9 = vpack.c.bf16 %v3707_v25, %v3691_v52  ;;  %v2646_v52 = vunpack.c.h.bf16 %v3610_v57  ;;  %v4599_v27 = vunpack.c.h.bf16 %v3590_v50  ;;  %v4615_v25 = vunpack.c.l.bf16 %v3780_v49 }
 0x1b1   : > { %v880_v41 = vadd.f32 %v879_v59, %v810_v37  ;;  %v1015_v2 = vadd.f32 %v1014_v31, %v1013_v43  ;;  %v3812_v43 = vpack.c.bf16 %v3635_v4, %v3624_v38  ;;  %v3837_v37 = vpack.c.bf16 %v3675_v16, %v3659_v48 }
 0x1b2   : > { %v2625_v38 = vunpack.c.l.bf16 %v3598_v12  ;;  %v3847_v31 = vpack.c.bf16 %v3699_v8, %v3683_v33  ;;  %v2633_v48 = vunpack.c.l.bf16 %v3606_v36  ;;  %v3864_v12 = vpack.c.bf16 %v3731_v29, %v3715_v47 }
 0x1b3   : > { %881 = vst [vmem:[#allocation2] sm:$0x1] %v880_v41  ;;  %v1016_v59 = vadd.f32 %v1015_v2, %v882_v30  ;;  %v2617_v30 = vunpack.c.l.bf16 %v3590_v50  ;;  %v3829_v41 = vpack.c.bf16 %v3667_v62, %v3651_v32  ;;  %v2634_v32 = vunpack.c.h.bf16 %v3606_v36 }
 0x1b4   : > { %v2642_v4 = vunpack.c.h.bf16 %v3614_v5  ;;  %v2653_v47 = vunpack.c.l.bf16 %v3618_v23  ;;  %v2654_v36 = vunpack.c.h.bf16 %v3618_v23  ;;  %v2649_v2 = vunpack.c.l.bf16 %v3622_v35 }
 0x1b5   : > { %1017 = vst [vmem:[#allocation3] sm:$0x1] %v1016_v59  ;;  %v2650_v5 = vunpack.c.h.bf16 %v3622_v35  ;;  %v4602_v50 = vunpack.c.l.bf16 %v3594_v0  ;;  %v4618_v29 = vunpack.c.l.bf16 %v3801_v3 }
 0x1ba   : > { %v1346_v62 = vld [vmem:[#allocation2] sm:$0x1] }
 0x1bb   : > { %v1347_v59 = vmul.f32 0.001953125, %v1346_v62  ;;  %v2645_v62 = vunpack.c.l.bf16 %v3610_v57  ;;  %v2713_v57 = vunpack.c.l.bf16 %v2584_v26 }
 0x1bc   : > { %v1348_v33 = vld [vmem:[#allocation3] sm:$0x1] }
 0x1bd   : > { %v1350_v8 = vmul.f32 %v1347_v59, %v1347_v59  ;;  %v1349_v16 = vmul.f32 0.001953125, %v1348_v33  ;;  %v3871_v6 = vrot.slane %v1347_v59, %v4585_v53  ;;  %v2714_v33 = vunpack.c.h.bf16 %v2584_v26 }
 0x1be   : > { %v4612_v59 = vunpack.c.l.bf16 %v3788_v61 }
 0x1bf   : > { %v1351_v58 = vsub.f32 %v1349_v16, %v1350_v8  ;;  %v3884_v24 = vsub.f32 %v2713_v57, %v3871_v6  ;;  %v3887_v16 = vsub.f32 %v2714_v33, %v3871_v6  ;;  %v3892_v23 = vsub.f32 %v2593_v56, %v3871_v6 }
 0x1c0   : > { %v3902_v35 = vsub.f32 %v2597_v63, %v3871_v6  ;;  %v3907_v26 = vsub.f32 %v2598_v13, %v3871_v6  ;;  %v3912_v56 = vsub.f32 %v2601_v20, %v3871_v6  ;;  %v3917_v51 = vsub.f32 %v2602_v40, %v3871_v6 }
 0x1c1   : > { %v1352_v53 = vadd.f32 1e-05, %v1351_v58  ;;  %v3897_v58 = vsub.f32 %v2594_v21, %v3871_v6  ;;  %v4597_v21 = vunpack.c.l.bf16 %v3570_v1  ;;  %v3927_v13 = vsub.f32 %v4598_v45, %v3871_v6 }
 0x1c2   : > { %v3932_v20 = vsub.f32 %v2609_v28, %v3871_v6  ;;  %v3937_v7 = vsub.f32 %v2610_v42, %v3871_v6  ;;  %v3942_v40 = vsub.f32 %v2613_v14, %v3871_v6  ;;  %v3947_v1 = vsub.f32 %v2614_v46, %v3871_v6 }
 0x1c3   : > { %3226 = vrsqrt.f32 %v1352_v53  ;;  %v3922_v63 = vsub.f32 %v4597_v21, %v3871_v6  ;;  %v3952_v28 = vsub.f32 %v2617_v30, %v3871_v6  ;;  %v3957_v42 = vsub.f32 %v4599_v27, %v3871_v6 }
 0x1c4   : > { %v4600_v53 = vunpack.c.l.bf16 %v3586_v39  ;;  %v3967_v46 = vsub.f32 %v4601_v19, %v3871_v6  ;;  %v3970_v8 = vsub.f32 %v2625_v38, %v3871_v6  ;;  %v3973_v30 = vsub.f32 %v2626_v10, %v3871_v6 }
 0x1c5   : > { %v3978_v57 = vsub.f32 %v4602_v50, %v3871_v6  ;;  %v4603_v33 = vunpack.c.h.bf16 %v3594_v0  ;;  %v3986_v39 = vsub.f32 %v2633_v48, %v3871_v6  ;;  %v3989_v45 = vsub.f32 %v2634_v32, %v3871_v6 }
 0x1c6   : > { %v3962_v14 = vsub.f32 %v4600_v53, %v3871_v6  ;;  %v3992_v38 = vsub.f32 %v2637_v54, %v3871_v6  ;;  %v3995_v10 = vsub.f32 %v2638_v17, %v3871_v6  ;;  %v3998_v27 = vsub.f32 %v2641_v55, %v3871_v6 }
 0x1c7   : > { %v3983_v21 = vsub.f32 %v4603_v33, %v3871_v6  ;;  %v4001_v53 = vsub.f32 %v2642_v4, %v3871_v6  ;;  %v4004_v0 = vsub.f32 %v2645_v62, %v3871_v6  ;;  %v4007_v48 = vsub.f32 %v2646_v52, %v3871_v6 }
 0x1c8   : > { %v4010_v32 = vsub.f32 %v2649_v2, %v3871_v6  ;;  %v4013_v54 = vsub.f32 %v2650_v5, %v3871_v6  ;;  %v4016_v17 = vsub.f32 %v2653_v47, %v3871_v6  ;;  %v4019_v55 = vsub.f32 %v2654_v36, %v3871_v6 }
 0x1c9   : > { %v4604_v4 = vunpack.c.l.bf16 %v3758_v60  ;;  %v4605_v52 = vunpack.c.h.bf16 %v3758_v60  ;;  %v4606_v2 = vunpack.c.l.bf16 %v3754_v44  ;;  %v4607_v47 = vunpack.c.h.bf16 %v3754_v44 }
 0x1ca   : > { %v4608_v50 = vunpack.c.l.bf16 %v3774_v34  ;;  %v4609_v60 = vunpack.c.h.bf16 %v3774_v34  ;;  %v4611_v44 = vunpack.c.h.bf16 %v3765_v18  ;;  %v4613_v34 = vunpack.c.h.bf16 %v3788_v61 }
 0x1cb   : > { %v4024_v62 = vsub.f32 %v4604_v4, %v3871_v6  ;;  %v4029_v19 = vsub.f32 %v4605_v52, %v3871_v6  ;;  %v4034_v5 = vsub.f32 %v4606_v2, %v3871_v6  ;;  %v4039_v36 = vsub.f32 %v4607_v47, %v3871_v6 }
 0x1cc   : > { %v4044_v33 = vsub.f32 %v4608_v50, %v3871_v6  ;;  %v4049_v4 = vsub.f32 %v4609_v60, %v3871_v6  ;;  %v4610_v52 = vunpack.c.l.bf16 %v3765_v18  ;;  %v4059_v47 = vsub.f32 %v4611_v44, %v3871_v6 }
 0x1cd   : > { %v4064_v50 = vsub.f32 %v4612_v59, %v3871_v6  ;;  %v4069_v60 = vsub.f32 %v4613_v34, %v3871_v6  ;;  %v4616_v18 = vunpack.c.h.bf16 %v3780_v49  ;;  %v4084_v59 = vsub.f32 %v4618_v29, %v3871_v6 }
 0x1ce   : > { %v4054_v2 = vsub.f32 %v4610_v52, %v3871_v6  ;;  %v4074_v52 = vsub.f32 %v4615_v25, %v3871_v6  ;;  %v4619_v61 = vunpack.c.h.bf16 %v3801_v3  ;;  %v4623_v49 = vunpack.c.h.bf16 %v3794_v11 }
 0x1cf   : > { %4614 = vst [vmem:[#allocation13_spill] sm:$0xff] %v4069_v60  ;;  %v4079_v44 = vsub.f32 %v4616_v18, %v3871_v6  ;;  %v4621_v60 = vunpack.c.l.bf16 %v3794_v11  ;;  %v4626_v3 = vunpack.c.h.bf16 %v3819_v22  ;;  %v4630_v11 = vunpack.c.h.bf16 %v3812_v43 }
 0x1d0   : > { %v4089_v34 = vsub.f32 %v4619_v61, %v3871_v6  ;;  %v4099_v18 = vsub.f32 %v4623_v49, %v3871_v6 }
 0x1d1   : > { %4617 = vst [vmem:[#allocation14_spill] sm:$0xff] %v4079_v44  ;;  %v4094_v25 = vsub.f32 %v4621_v60, %v3871_v6  ;;  %v4624_v44 = vunpack.c.l.bf16 %v3819_v22  ;;  %v4109_v61 = vsub.f32 %v4626_v3, %v3871_v6  ;;  %v4119_v49 = vsub.f32 %v4630_v11, %v3871_v6 }
 0x1d2   : > { %4620 = vst [vmem:[#allocation15_spill] sm:$0xff] %v4089_v34  ;;  %v4628_v34 = vunpack.c.l.bf16 %v3812_v43  ;;  %v4633_v22 = vunpack.c.h.bf16 %v3837_v37  ;;  %v4637_v11 = vunpack.c.h.bf16 %v3829_v41 }
 0x1d3   : > { %4622 = vst [vmem:[#allocation16_spill] sm:$0xff] %v4094_v25  ;;  %v4104_v29 = vsub.f32 %v4624_v44, %v3871_v6  ;;  %4627 = vst [vmem:[#allocation18_spill] sm:$0xff] %v4109_v61  ;;  %v3227_v25 = vpop.eup %3226  ;;  %v4632_v44 = vunpack.c.l.bf16 %v3837_v37  ;;  %v4636_v61 = vsub.s32 0, %v3805_v15  ;;  %v4640_v15 = vunpack.c.l.bf16 %v3847_v31 }
 0x1d4   : > { %v4114_v60 = vsub.f32 %v4628_v34, %v3871_v6  ;;  %4631 = vst [vmem:[#allocation20_spill] sm:$0xff] %v4119_v49  ;;  %v4129_v3 = vsub.f32 %v4633_v22, %v3871_v6  ;;  %v4635_v34 = vunpack.c.l.bf16 %v3829_v41  ;;  %v4143_v49 = vsub.f32 %v4637_v11, %v3871_v6 }
 0x1d5   : > { %4625 = vst [vmem:[#allocation17_spill] sm:$0xff] %v4104_v29  ;;  %v4124_v29 = vsub.f32 %v4632_v44, %v3871_v6  ;;  %v4138_v43 = vrot.slane %v3227_v25, %v4636_v61  ;;  %v4638_v44 = vunpack.c.l.bf16 %v3854_v9  ;;  %v4639_v22 = vunpack.c.h.bf16 %v3854_v9 }
 0x1d6   : > { %4629 = vst [vmem:[#allocation19_spill] sm:$0xff] %v4114_v60  ;;  %4634 = vst [vmem:[#allocation21_spill] sm:$0xff] %v4129_v3  ;;  %v4134_v60 = vsub.f32 %v4635_v34, %v3871_v6  ;;  %v4158_v25 = vsub.f32 %v4640_v15, %v3871_v6  ;;  %v4641_v41 = vunpack.c.h.bf16 %v3847_v31  ;;  %v4642_v34 = vunpack.c.l.bf16 %v3864_v12 }
 0x1d7   : > { %v4148_v37 = vsub.f32 %v4638_v44, %v3871_v6  ;;  %v4153_v3 = vsub.f32 %v4639_v22, %v3871_v6  ;;  %v4643_v9 = vunpack.c.h.bf16 %v3864_v12  ;;  %v1618_v22 = vmul.f32 %v4138_v43, %v3884_v24 }
 0x1d8   : > { %v4163_v61 = vsub.f32 %v4641_v41, %v3871_v6  ;;  %v4168_v11 = vsub.f32 %v4642_v34, %v3871_v6  ;;  %v1619_v15 = vmul.f32 %v4138_v43, %v3887_v16  ;;  %v4181_v31 = vmul.f32 %v4138_v43, %v3892_v23 }
 0x1d9   : > { %v4173_v44 = vsub.f32 %v4643_v9, %v3871_v6  ;;  %v4185_v41 = vmul.f32 %v4138_v43, %v3897_v58  ;;  %v4189_v34 = vmul.f32 %v4138_v43, %v3902_v35  ;;  %v4193_v12 = vmul.f32 %v4138_v43, %v3907_v26 }
 0x1da   : > { %v4197_v24 = vmul.f32 %v4138_v43, %v3912_v56  ;;  %v4201_v6 = vmul.f32 %v4138_v43, %v3917_v51  ;;  %v1682_v16 = vmax.f32 %v1618_v22, 0.0  ;;  %v1683_v23 = vmax.f32 %v1619_v15, 0.0  ;;  %v4644_v22 = vld [vmem:[#allocation13_spill] sm:$0xff]  ;;  %v4645_v15 = vld [vmem:[#allocation14_spill] sm:$0xff] }
 0x1db   : > { %v4205_v58 = vmul.f32 %v4138_v43, %v3922_v63  ;;  %v4209_v35 = vmul.f32 %v4138_v43, %v3927_v13  ;;  %v4213_v26 = vmul.f32 %v4138_v43, %v3932_v20  ;;  %v4217_v56 = vmul.f32 %v4138_v43, %v3937_v7 }
 0x1dc   : > { %v4221_v51 = vmul.f32 %v4138_v43, %v3942_v40  ;;  %v4225_v63 = vmul.f32 %v4138_v43, %v3947_v1  ;;  %v2872_v9 = vpack.c.bf16 %v1683_v23, %v1682_v16  ;;  %v4229_v13 = vmul.f32 %v4138_v43, %v3952_v28  ;;  %v4648_v16 = vld [vmem:[#allocation15_spill] sm:$0xff]  ;;  %v4650_v23 = vld [vmem:[#allocation16_spill] sm:$0xff] }
 0x1dd   : > { %v4233_v20 = vmul.f32 %v4138_v43, %v3957_v42  ;;  %v4237_v7 = vmul.f32 %v4138_v43, %v3962_v14  ;;  %v4241_v40 = vmul.f32 %v4138_v43, %v3967_v46  ;;  %v4245_v1 = vmul.f32 %v4138_v43, %v3970_v8 }
 0x1de   : > { %v4249_v28 = vmul.f32 %v4138_v43, %v3973_v30  ;;  %v4253_v42 = vmul.f32 %v4138_v43, %v3978_v57  ;;  %2970 = vst [vmem:[%s4257_s17 + $0xf0] sm:$0xff] %v2872_v9   ;;  %v4262_v14 = vmul.f32 %v4138_v43, %v3983_v21  ;;  %v4266_v46 = vmul.f32 %v4138_v43, %v3986_v39 }
 0x1df   : > { %v4270_v8 = vmul.f32 %v4138_v43, %v3989_v45  ;;  %v4274_v30 = vmul.f32 %v4138_v43, %v3992_v38  ;;  %v4278_v57 = vmul.f32 %v4138_v43, %v3995_v10  ;;  %v4282_v21 = vmul.f32 %v4138_v43, %v3998_v27 }
 0x1e0   : > { %v4286_v39 = vmul.f32 %v4138_v43, %v4001_v53  ;;  %v4290_v45 = vmul.f32 %v4138_v43, %v4004_v0  ;;  %v4294_v38 = vmul.f32 %v4138_v43, %v4007_v48  ;;  %v4298_v10 = vmul.f32 %v4138_v43, %v4010_v32 }
 0x1e1   : > { %v4302_v27 = vmul.f32 %v4138_v43, %v4013_v54  ;;  %v4306_v53 = vmul.f32 %v4138_v43, %v4016_v17  ;;  %v4310_v0 = vmul.f32 %v4138_v43, %v4019_v55  ;;  %v4314_v48 = vmul.f32 %v4138_v43, %v4024_v62 }
 0x1e2   : > { %v4318_v32 = vmul.f32 %v4138_v43, %v4029_v19  ;;  %v4322_v54 = vmul.f32 %v4138_v43, %v4034_v5  ;;  %v4326_v17 = vmul.f32 %v4138_v43, %v4039_v36  ;;  %v4330_v55 = vmul.f32 %v4138_v43, %v4044_v33 }
 0x1e3   : > { %v4334_v62 = vmul.f32 %v4138_v43, %v4049_v4  ;;  %v4338_v19 = vmul.f32 %v4138_v43, %v4054_v2  ;;  %v4342_v5 = vmul.f32 %v4138_v43, %v4059_v47  ;;  %v4346_v36 = vmul.f32 %v4138_v43, %v4064_v50 }
 0x1e4   : > { %v4350_v33 = vmul.f32 %v4138_v43, %v4644_v22  ;;  %v4354_v4 = vmul.f32 %v4138_v43, %v4074_v52  ;;  %v4358_v2 = vmul.f32 %v4138_v43, %v4645_v15  ;;  %v4362_v47 = vmul.f32 %v4138_v43, %v4084_v59  ;;  %v4652_v22 = vld [vmem:[#allocation17_spill] sm:$0xff] }
 0x1e5   : > { %v4366_v50 = vmul.f32 %v4138_v43, %v4648_v16  ;;  %v4370_v9 = vmul.f32 %v4138_v43, %v4650_v23  ;;  %v4374_v52 = vmul.f32 %v4138_v43, %v4099_v18  ;;  %v4378_v15 = vmul.f32 %v4138_v43, %v4652_v22 }
 0x1e6   : > { %4646 = vst [vmem:[#allocation13_spill] sm:$0xff] %v4358_v2  ;;  %4647 = vst [vmem:[#allocation14_spill] sm:$0xff] %v4362_v47  ;;  %v4653_v2 = vld [vmem:[#allocation18_spill] sm:$0xff]  ;;  %v4654_v47 = vld [vmem:[#allocation19_spill] sm:$0xff]  ;;  %v4394_v18 = vmul.f32 %v4138_v43, %v4124_v29  ;;  %v4414_v29 = vmul.f32 %v4138_v43, %v4153_v3  ;;  %v1623_v3 = vmax.f32 %v4185_v41, 0.0  ;;  %v1634_v41 = vmax.f32 %v4229_v13, 0.0 }
 0x1e7   : > { %4649 = vst [vmem:[#allocation15_spill] sm:$0xff] %v4366_v50  ;;  %4651 = vst [vmem:[#allocation16_spill] sm:$0xff] %v4374_v52  ;;  %v4382_v59 = vmul.f32 %v4138_v43, %v4653_v2  ;;  %v4386_v16 = vmul.f32 %v4138_v43, %v4654_v47  ;;  %v4655_v50 = vld [vmem:[#allocation20_spill] sm:$0xff]  ;;  %v4656_v52 = vld [vmem:[#allocation21_spill] sm:$0xff]  ;;  %v4402_v2 = vmul.f32 %v4138_v43, %v4134_v60  ;;  %v1645_v13 = vmax.f32 %v4278_v57, 0.0 }
 0x1e8   : > { %v4390_v23 = vmul.f32 %v4138_v43, %v4655_v50  ;;  %v4398_v22 = vmul.f32 %v4138_v43, %v4656_v52  ;;  %v4406_v47 = vmul.f32 %v4138_v43, %v4143_v49  ;;  %v4410_v50 = vmul.f32 %v4138_v43, %v4148_v37  ;;  %4660 = vst [vmem:[#allocation20_spill] sm:$0xff] %v4414_v29 }
 0x1e9   : > { %4657 = vst [vmem:[#allocation17_spill] sm:$0xff] %v4402_v2  ;;  %v4418_v52 = vmul.f32 %v4138_v43, %v4158_v25  ;;  %v4422_v60 = vmul.f32 %v4138_v43, %v4163_v61  ;;  %v4426_v49 = vmul.f32 %v4138_v43, %v4168_v11  ;;  %v4430_v37 = vmul.f32 %v4138_v43, %v4173_v44 }
 0x1ea   : > { %4658 = vst [vmem:[#allocation18_spill] sm:$0xff] %v4406_v47  ;;  %4659 = vst [vmem:[#allocation19_spill] sm:$0xff] %v4410_v50  ;;  %v1622_v50 = vmax.f32 %v4181_v31, 0.0  ;;  %v1624_v29 = vmax.f32 %v4189_v34, 0.0  ;;  %v1625_v25 = vmax.f32 %v4193_v12, 0.0  ;;  %v1627_v61 = vmax.f32 %v4201_v6, 0.0 }
 0x1eb   : > { %4661 = vst [vmem:[#allocation21_spill] sm:$0xff] %v4418_v52  ;;  %4662 = vst [vmem:[#allocation22_spill] sm:$0xff] %v4422_v60  ;;  %v1626_v52 = vmax.f32 %v4197_v24, 0.0  ;;  %v1628_v60 = vmax.f32 %v4205_v58, 0.0  ;;  %v1629_v11 = vmax.f32 %v4209_v35, 0.0  ;;  %v1631_v43 = vmax.f32 %v4217_v56, 0.0 }
 0x1ec   : > { %4663 = vst [vmem:[#allocation23_spill] sm:$0xff] %v4426_v49  ;;  %4664 = vst [vmem:[#allocation24_spill] sm:$0xff] %v4430_v37  ;;  %v1630_v49 = vmax.f32 %v4213_v26, 0.0  ;;  %v1632_v44 = vmax.f32 %v4221_v51, 0.0  ;;  %v1633_v31 = vmax.f32 %v4225_v63, 0.0  ;;  %v1635_v34 = vmax.f32 %v4233_v20, 0.0 }
 0x1ed   : > { %v1636_v12 = vmax.f32 %v4237_v7, 0.0  ;;  %v1637_v24 = vmax.f32 %v4241_v40, 0.0  ;;  %v1638_v6 = vmax.f32 %v4245_v1, 0.0  ;;  %v1639_v58 = vmax.f32 %v4249_v28, 0.0  ;;  %v4666_v37 = vld [vmem:[#allocation14_spill] sm:$0xff] }
 0x1ee   : > { %v1640_v35 = vmax.f32 %v4253_v42, 0.0  ;;  %v1641_v26 = vmax.f32 %v4262_v14, 0.0  ;;  %v1642_v56 = vmax.f32 %v4266_v46, 0.0  ;;  %v1643_v51 = vmax.f32 %v4270_v8, 0.0  ;;  %v4667_v47 = vld [vmem:[#allocation15_spill] sm:$0xff]  ;;  %v4668_v2 = vld [vmem:[#allocation16_spill] sm:$0xff] }
 0x1ef   : > { %v1644_v63 = vmax.f32 %v4274_v30, 0.0  ;;  %v1646_v20 = vmax.f32 %v4282_v21, 0.0  ;;  %v1647_v7 = vmax.f32 %v4286_v39, 0.0  ;;  %v1648_v40 = vmax.f32 %v4290_v45, 0.0 }
 0x1f0   : > { %v1649_v1 = vmax.f32 %v4294_v38, 0.0  ;;  %v1650_v28 = vmax.f32 %v4298_v10, 0.0  ;;  %v1651_v42 = vmax.f32 %v4302_v27, 0.0  ;;  %v1652_v14 = vmax.f32 %v4306_v53, 0.0 }
 0x1f1   : > { %v1653_v46 = vmax.f32 %v4310_v0, 0.0  ;;  %v1654_v8 = vmax.f32 %v4314_v48, 0.0  ;;  %v1655_v30 = vmax.f32 %v4318_v32, 0.0  ;;  %v1656_v57 = vmax.f32 %v4322_v54, 0.0  ;;  %v4665_v48 = vld [vmem:[#allocation13_spill] sm:$0xff] }
 0x1f2   : > { %v1657_v21 = vmax.f32 %v4326_v17, 0.0  ;;  %v1658_v39 = vmax.f32 %v4330_v55, 0.0  ;;  %v1659_v45 = vmax.f32 %v4334_v62, 0.0  ;;  %v1660_v38 = vmax.f32 %v4338_v19, 0.0 }
 0x1f3   : > { %v1661_v10 = vmax.f32 %v4342_v5, 0.0  ;;  %v1662_v27 = vmax.f32 %v4346_v36, 0.0  ;;  %v1663_v53 = vmax.f32 %v4350_v33, 0.0  ;;  %v1664_v0 = vmax.f32 %v4354_v4, 0.0 }
 0x1f4   : > { %v1665_v32 = vmax.f32 %v4665_v48, 0.0  ;;  %v1666_v54 = vmax.f32 %v4666_v37, 0.0  ;;  %v1667_v17 = vmax.f32 %v4667_v47, 0.0  ;;  %v1668_v55 = vmax.f32 %v4370_v9, 0.0  ;;  %v4669_v37 = vld [vmem:[#allocation17_spill] sm:$0xff]  ;;  %v4670_v9 = vld [vmem:[#allocation18_spill] sm:$0xff] }
 0x1f5   : > { %v1669_v62 = vmax.f32 %v4668_v2, 0.0  ;;  %v1670_v19 = vmax.f32 %v4378_v15, 0.0  ;;  %v1671_v5 = vmax.f32 %v4382_v59, 0.0  ;;  %v1672_v36 = vmax.f32 %v4386_v16, 0.0  ;;  %v4671_v15 = vld [vmem:[#allocation19_spill] sm:$0xff]  ;;  %v4672_v16 = vld [vmem:[#allocation20_spill] sm:$0xff] }
 0x1f6   : > { %v1673_v33 = vmax.f32 %v4390_v23, 0.0  ;;  %v1674_v4 = vmax.f32 %v4394_v18, 0.0  ;;  %v1675_v48 = vmax.f32 %v4398_v22, 0.0  ;;  %v1676_v47 = vmax.f32 %v4669_v37, 0.0  ;;  %v4673_v18 = vld [vmem:[#allocation21_spill] sm:$0xff]  ;;  %v4674_v37 = vld [vmem:[#allocation22_spill] sm:$0xff] }
 0x1f7   : > { %v1677_v2 = vmax.f32 %v4670_v9, 0.0  ;;  %v1678_v59 = vmax.f32 %v4671_v15, 0.0  ;;  %v1679_v23 = vmax.f32 %v4672_v16, 0.0  ;;  %v1680_v22 = vmax.f32 %v4673_v18, 0.0  ;;  %v4675_v15 = vld [vmem:[#allocation23_spill] sm:$0xff]  ;;  %v4676_v18 = vld [vmem:[#allocation24_spill] sm:$0xff] }
 0x1f8   : > { %v1681_v9 = vmax.f32 %v4674_v37, 0.0  ;;  %v1684_v16 = vmax.f32 %v4675_v15, 0.0  ;;  %v1685_v37 = vmax.f32 %v4676_v18, 0.0  ;;  %v2722_v15 = vpack.c.bf16 %v1623_v3, %v1622_v50 }
 0x1f9   : > { %v2727_v18 = vpack.c.bf16 %v1625_v25, %v1624_v29  ;;  %v2732_v3 = vpack.c.bf16 %v1627_v61, %v1626_v52  ;;  %v2737_v50 = vpack.c.bf16 %v1629_v11, %v1628_v60  ;;  %v2742_v25 = vpack.c.bf16 %v1631_v43, %v1630_v49 }
 0x1fa   : > { %v2747_v29 = vpack.c.bf16 %v1633_v31, %v1632_v44  ;;  %v2752_v52 = vpack.c.bf16 %v1635_v34, %v1634_v41  ;;  %2723 = vst [vmem:[%s4257_s17] sm:$0xff] %v2722_v15   ;;  %v2757_v61 = vpack.c.bf16 %v1637_v24, %v1636_v12  ;;  %v2762_v11 = vpack.c.bf16 %v1639_v58, %v1638_v6 }
 0x1fb   : > { %2941 = vst [vmem:[%s4257_s17 + $0x8] sm:$0xff] %v2727_v18   ;;  %2942 = vst [vmem:[%s4257_s17 + $0x10] sm:$0xff] %v2732_v3   ;;  %v2767_v60 = vpack.c.bf16 %v1641_v26, %v1640_v35  ;;  %v2772_v43 = vpack.c.bf16 %v1643_v51, %v1642_v56  ;;  %v2777_v49 = vpack.c.bf16 %v1645_v13, %v1644_v63 }
 0x1fc   : > { %2943 = vst [vmem:[%s4257_s17 + $0x18] sm:$0xff] %v2737_v50   ;;  %2944 = vst [vmem:[%s4257_s17 + $0x20] sm:$0xff] %v2742_v25   ;;  %v2782_v44 = vpack.c.bf16 %v1647_v7, %v1646_v20  ;;  %v2787_v31 = vpack.c.bf16 %v1649_v1, %v1648_v40  ;;  %v2792_v41 = vpack.c.bf16 %v1651_v42, %v1650_v28 }
 0x1fd   : > { %2945 = vst [vmem:[%s4257_s17 + $0x28] sm:$0xff] %v2747_v29   ;;  %2946 = vst [vmem:[%s4257_s17 + $0x30] sm:$0xff] %v2752_v52   ;;  %v2797_v34 = vpack.c.bf16 %v1653_v46, %v1652_v14  ;;  %v2802_v12 = vpack.c.bf16 %v1655_v30, %v1654_v8  ;;  %v2807_v24 = vpack.c.bf16 %v1657_v21, %v1656_v57 }
 0x1fe   : > { %2947 = vst [vmem:[%s4257_s17 + $0x38] sm:$0xff] %v2757_v61   ;;  %2948 = vst [vmem:[%s4257_s17 + $0x40] sm:$0xff] %v2762_v11   ;;  %v2812_v6 = vpack.c.bf16 %v1659_v45, %v1658_v39  ;;  %v2817_v58 = vpack.c.bf16 %v1661_v10, %v1660_v38  ;;  %v2822_v35 = vpack.c.bf16 %v1663_v53, %v1662_v27 }
 0x1ff   : > { %2949 = vst [vmem:[%s4257_s17 + $0x48] sm:$0xff] %v2767_v60   ;;  %2950 = vst [vmem:[%s4257_s17 + $0x50] sm:$0xff] %v2772_v43   ;;  %v2827_v26 = vpack.c.bf16 %v1665_v32, %v1664_v0  ;;  %v2832_v56 = vpack.c.bf16 %v1667_v17, %v1666_v54  ;;  %v2837_v51 = vpack.c.bf16 %v1669_v62, %v1668_v55 }
 0x200   : > { %2951 = vst [vmem:[%s4257_s17 + $0x58] sm:$0xff] %v2777_v49   ;;  %2952 = vst [vmem:[%s4257_s17 + $0x60] sm:$0xff] %v2782_v44   ;;  %v2842_v63 = vpack.c.bf16 %v1671_v5, %v1670_v19  ;;  %v2847_v13 = vpack.c.bf16 %v1673_v33, %v1672_v36  ;;  %v2852_v20 = vpack.c.bf16 %v1675_v48, %v1674_v4 }
 0x201   : > { %2953 = vst [vmem:[%s4257_s17 + $0x68] sm:$0xff] %v2787_v31   ;;  %2954 = vst [vmem:[%s4257_s17 + $0x70] sm:$0xff] %v2792_v41   ;;  %v2857_v7 = vpack.c.bf16 %v1677_v2, %v1676_v47  ;;  %v2862_v40 = vpack.c.bf16 %v1679_v23, %v1678_v59  ;;  %v2867_v1 = vpack.c.bf16 %v1681_v9, %v1680_v22 }
 0x202   : > { %2955 = vst [vmem:[%s4257_s17 + $0x78] sm:$0xff] %v2797_v34   ;;  %2956 = vst [vmem:[%s4257_s17 + $0x80] sm:$0xff] %v2802_v12   ;;  %v2877_v28 = vpack.c.bf16 %v1685_v37, %v1684_v16 }
 0x203   : > { %2957 = vst [vmem:[%s4257_s17 + $0x88] sm:$0xff] %v2807_v24   ;;  %2958 = vst [vmem:[%s4257_s17 + $0x90] sm:$0xff] %v2812_v6  }
 0x204   : > { %2959 = vst [vmem:[%s4257_s17 + $0x98] sm:$0xff] %v2817_v58   ;;  %2960 = vst [vmem:[%s4257_s17 + $0xa0] sm:$0xff] %v2822_v35  }
 0x205   : > { %2961 = vst [vmem:[%s4257_s17 + $0xa8] sm:$0xff] %v2827_v26   ;;  %2962 = vst [vmem:[%s4257_s17 + $0xb0] sm:$0xff] %v2832_v56  }
 0x206   : > { %2963 = vst [vmem:[%s4257_s17 + $0xb8] sm:$0xff] %v2837_v51   ;;  %2964 = vst [vmem:[%s4257_s17 + $0xc0] sm:$0xff] %v2842_v63  }
 0x207   : > { %2965 = vst [vmem:[%s4257_s17 + $0xc8] sm:$0xff] %v2847_v13   ;;  %2966 = vst [vmem:[%s4257_s17 + $0xd0] sm:$0xff] %v2852_v20  }
 0x208   : > { %2967 = vst [vmem:[%s4257_s17 + $0xd8] sm:$0xff] %v2857_v7   ;;  %2968 = vst [vmem:[%s4257_s17 + $0xe0] sm:$0xff] %v2862_v40  }
 0x209   : > { %2969 = vst [vmem:[%s4257_s17 + $0xe8] sm:$0xff] %v2867_v1   ;;  %2971 = vst [vmem:[%s4257_s17 + $0xf8] sm:$0xff] %v2877_v28  }
 0x20a   : > { %3295 = shalt.err (!%p3292_p5)
}
 0x20b   : > { %s3296_s6 = scalar_lea.hbm %s4518_s23, 4096  ;;  %s3300_s4 = scalar_lea.hbm %s4582_s2, 8192 }
 0x20c   : > { %p3297_p7 = scmp.ne.s32.totalorder %s4518_s23, %s3296_s6  ;;  %p3301_p9 = scmp.lt.s32.totalorder %s4518_s23, %s4582_s2 }
 0x20d   : > { %p3302_p11 = scmp.lt.s32.totalorder %s3300_s4, %s3296_s6 }
 0x20e   : > { %p3298_p4 = pnand %p3297_p7, %p3481_p13 }
 0x20f   : > { %p3303_p10 = por %p3302_p11, %p3301_p9 }
 0x210   : > { %p3299_p6 = pneg %p3298_p4 }
 0x212   : > { %p3304_p1 = pnand %p3303_p10, %p3299_p6 }
 0x214   : > { %3307 = shalt.err (!%p3304_p1)
}
 0x215   : > { %s3374_s22 = smov 64   ;;  %s3375_s17 = smov 4  }
 0x216   : > { %3114 = dma.vmem_to_hbm [thread:$0]  (%p3481_p13), %s4520_s21, 4096, %s4518_s23, %s2007_s24, %s3374_s22, %s3374_s22, %s3375_s17  }
 0x217 PF: > { %s2035_s19 = sand.u32 1, %s3346_s9   ;;  %p4677_p8 = scmp.ne.s32.totalorder %s4589_s20, 0 }
 0x218   : > { %p4678_p12 = scmp.ge.s32.totalorder %s3366_s14, 2  ;;  %s2036_s12 = scalar_lea.sflag [#allocation6], %s2035_s19 }
 0x21a   : > { %p3125_p0 = pnand %p4678_p12, %p4677_p8 }
 0x21c   : > { %p3126_p2 = pneg %p3125_p0 }
 0x21e   : > { %3341 = dma.done.wait (%p3126_p2), %s2036_s12, 4096  }
 0x21f   : > { %3343 = vsyncadd (%p3126_p2), %s2036_s12, 4294963200  ;;  %s19_s14 = sadd.s32 1, %s3366_s14   ;;  %s4679_s9 = smov %s3350_s10 }
 0x220   : > { %p16_p3 = scmp.ge.s32.totalorder %s19_s14, 4   ;;  %s4680_s10 = smov %s3354_s11 }
 0x221   : > { %s4681_s11 = smov %s3490_s15  ;;  %s4682_s12 = smov %s3362_s13 }
 0x222   : > { %s4683_s13 = smov %s4685_s25  ;;  %18 = sbr.rel (!%p16_p3) target bundleno = 7 (0x7), region = 86 }
 0x227   :  { %2041 = vsyncpa [#allocation5], 1 }
 0x228   :  { %2043 = vsyncpa [#allocation5 + $0x1], 1 }
 0x229   :  { %2044 = vsyncpa [#allocation8], 1 }
 0x22a   :  { %2045 = vsyncpa [#allocation6], 1 }
 0x22b   :  { %2047 = vsyncpa [#allocation6 + $0x1], 1 }

</bundles_post_ra>
